<compile_context>
chip_gen: v7x
topology: tpu7x:2x2x1
jax: 0.10.0
libtpu: 0.0.40
codegen_flags: <defaults>
</compile_context>

<pallas_src>
import functools

import jax
import jax.numpy as jnp
from jax.experimental import pallas as pl
from jax.experimental.pallas import tpu as pltpu


# ------------------------------ fused kernel ------------------------------

def _cognn_fused_kernel(
    x_ref, adj_ref, gdiff_ref,
    enc_w_ref, enc_b_ref, ln_g_ref, ln_b_ref,
    env_wr_ref, env_wn_ref, env_b_ref,
    act_wr0_ref, act_wn0_ref, act_b0_ref,
    act_wr1_ref, act_wn1_ref, act_b1_ref,
    dec_w_ref, dec_b_ref,
    out_ref,
    *, num_layers, skip,
):
    f32 = jnp.float32
    bf16 = jnp.bfloat16

    def mm(a, b):                      # bf16 x bf16 -> f32 accumulation (MXU)
        return jnp.dot(a, b, preferred_element_type=f32)

    adj = adj_ref[0]                   # [N, N] bf16, resident for this graph
    gd = gdiff_ref[0]                  # [L, N, 2] f32 gumbel (keep - drop)
    ln_g = ln_g_ref[...]               # [1, D] f32
    ln_b = ln_b_ref[...]               # [1, D] f32

    def layernorm(v):                  # f32 in / f32 out
        mean = jnp.mean(v, axis=-1, keepdims=True)
        vc = v - mean
        var = jnp.mean(vc * vc, axis=-1, keepdims=True)
        return vc * jax.lax.rsqrt(var + 1e-5) * ln_g + ln_b

    # env_net[0] encoder: Linear, then dropout(identity) + relu.
    h = jnp.maximum(mm(x_ref[0], enc_w_ref[...]) + enc_b_ref[...], 0.0)

    for l in range(num_layers):        # static unroll; num_layers is tiny
        hn = layernorm(h)              # f32
        hb = hn.astype(bf16)           # MXU operand

        # ---- fused in/out action nets (shared A @ hn aggregation) ----
        agg = mm(adj, hb)                                            # [N, D]
        a0 = jnp.maximum(
            mm(hb, act_wr0_ref[...]) + mm(agg.astype(bf16), act_wn0_ref[...])
            + act_b0_ref[...], 0.0)                                  # [N, 2H]
        a0b = a0.astype(bf16)
        # logits "keep - drop" layer (out dim 2): project first, then A-matmul
        proj = mm(a0b, act_wn1_ref[...])                             # [N, 2]
        logit_d = (mm(a0b, act_wr1_ref[...]) + mm(adj, proj.astype(bf16))
                   + act_b1_ref[...])                                # [N, 2]

        # ---- hard Gumbel-softmax forward value, softmax/tau-free ----
        # keep == argmax(logits + g) picks class 0  <=>  diff + gdiff >= 0
        z = logit_d + gd[l]                                          # [N, 2]
        keep = (z >= 0.0).astype(f32)          # col 0 = keep_in, col 1 = keep_out
        keep_in = keep[:, 0:1]
        keep_out = keep[:, 1:2]

        # ---- env GraphConv with edge weights, A_w never materialized ----
        # (A * keep_in[dst] * keep_out[src]) @ hn == keep_in ⊙ (A @ (keep_out ⊙ hn))
        wagg = keep_in * mm(adj, (keep_out * hn).astype(bf16))       # [N, D]
        env_out = jnp.maximum(
            mm(hb, env_wr_ref[l]) + mm(wagg.astype(bf16), env_wn_ref[l])
            + env_b_ref[l], 0.0)               # relu; dropout = identity (eval)
        h = hn + env_out if skip else env_out  # reference skip adds post-LN x

    hn = layernorm(h)
    pooled = jnp.mean(hn, axis=0, keepdims=True)                     # [1, D]
    out_ref[0] = mm(pooled.astype(bf16), dec_w_ref[...]) + dec_b_ref[...]


# --------------------------- one-time param packing ---------------------------

def pack_params(params):
    """Hoisted out of the jitted forward: stack/concat/cast weights once."""
    bf16, f32 = jnp.bfloat16, jnp.float32
    d = params["enc_w"].shape[1]
    out_dim = params["dec_w"].shape[1]
    h_act = params["in_act"]["w_root0"].shape[1]
    ia, oa = params["in_act"], params["out_act"]

    # Layer 0 of the two action nets concatenated along the output dim.
    act_wr0 = jnp.concatenate([ia["w_root0"], oa["w_root0"]], axis=1).astype(bf16)
    act_wn0 = jnp.concatenate([ia["w_nb0"], oa["w_nb0"]], axis=1).astype(bf16)
    act_b0 = jnp.concatenate([ia["b0"], oa["b0"]]).reshape(1, 2 * h_act).astype(f32)

    # Logits layer folded into a "keep - drop" difference, block-diagonal across
    # the two action nets -> [2H, 2]: col 0 = in-diff, col 1 = out-diff.
    def diff(w):                      # [H, 2] -> [H, 1]
        return w[:, 0:1] - w[:, 1:2]

    zpad = jnp.zeros((h_act, 1), f32)
    act_wr1d = jnp.concatenate(
        [jnp.concatenate([diff(ia["w_root1"]), zpad], axis=1),
         jnp.concatenate([zpad, diff(oa["w_root1"])], axis=1)], axis=0).astype(bf16)
    act_wn1d = jnp.concatenate(
        [jnp.concatenate([diff(ia["w_nb1"]), zpad], axis=1),
         jnp.concatenate([zpad, diff(oa["w_nb1"])], axis=1)], axis=0).astype(bf16)
    act_b1d = jnp.concatenate(
        [ia["b1"][0:1] - ia["b1"][1:2],
         oa["b1"][0:1] - oa["b1"][1:2]]).reshape(1, 2).astype(f32)

    return {
        "enc_w": params["enc_w"].astype(bf16),
        "enc_b": params["enc_b"].reshape(1, d).astype(f32),
        "ln_g": params["ln_g"].reshape(1, d).astype(f32),
        "ln_b": params["ln_b"].reshape(1, d).astype(f32),
        "env_wr": jnp.stack([e["w_root"] for e in params["env"]]).astype(bf16),
        "env_wn": jnp.stack([e["w_nb"] for e in params["env"]]).astype(bf16),
        "env_b": jnp.stack(
            [e["b"].reshape(1, d) for e in params["env"]]).astype(f32),
        "act_wr0": act_wr0, "act_wn0": act_wn0, "act_b0": act_b0,
        "act_wr1d": act_wr1d, "act_wn1d": act_wn1d, "act_b1d": act_b1d,
        "dec_w": params["dec_w"].astype(bf16),
        "dec_b": params["dec_b"].reshape(1, out_dim).astype(f32),
    }


# ------------------------------- model glue -------------------------------

def cognn_forward(packed, x, adj, key, *, num_layers, tau=1.0, skip=True):
    """Batched forward: x [B,N,Fin] f32, adj [B,N,N] f32 (A[b,dst,src])."""
    # Hard (forward) gumbel one-hot is tau-invariant for tau > 0.
    del tau
    b, n, _ = x.shape
    out_dim = packed["dec_w"].shape[1]

    # One gumbel draw for all graphs/layers; fold into the keep-minus-drop diff.
    g = jax.random.gumbel(key, (b, num_layers, n, 4), jnp.float32)
    gdiff = g[..., 0::2] - g[..., 1::2]          # [B, L, N, 2]: (in, out)

    kernel = functools.partial(
        _cognn_fused_kernel, num_layers=num_layers, skip=skip)

    def batched(shape):               # one graph per grid step
        nd = len(shape)
        return pl.BlockSpec((1,) + tuple(shape[1:]),
                            lambda i, _nd=nd: (i,) + (0,) * (_nd - 1))

    def shared(arr):                  # same block every step -> stays in VMEM
        nd = arr.ndim
        return pl.BlockSpec(arr.shape, lambda i, _nd=nd: (0,) * _nd)

    w = packed
    result = pl.pallas_call(
        kernel,
        grid=(b,),
        in_specs=[
            batched(x.shape), batched(adj.shape), batched(gdiff.shape),
            shared(w["enc_w"]), shared(w["enc_b"]),
            shared(w["ln_g"]), shared(w["ln_b"]),
            shared(w["env_wr"]), shared(w["env_wn"]), shared(w["env_b"]),
            shared(w["act_wr0"]), shared(w["act_wn0"]), shared(w["act_b0"]),
            shared(w["act_wr1d"]), shared(w["act_wn1d"]), shared(w["act_b1d"]),
            shared(w["dec_w"]), shared(w["dec_b"]),
        ],
        out_specs=pl.BlockSpec((1, 1, out_dim), lambda i: (i, 0, 0)),
        out_shape=jax.ShapeDtypeStruct((b, 1, out_dim), jnp.float32),
        compiler_params=pltpu.CompilerParams(
            dimension_semantics=("parallel",)),
    )(x.astype(jnp.bfloat16), adj.astype(jnp.bfloat16), gdiff,
      w["enc_w"], w["enc_b"], w["ln_g"], w["ln_b"],
      w["env_wr"], w["env_wn"], w["env_b"],
      w["act_wr0"], w["act_wn0"], w["act_b0"],
      w["act_wr1d"], w["act_wn1d"], w["act_b1d"],
      w["dec_w"], w["dec_b"])

    # edge_ratio_node_mask is None => -1 * ones(num_layers)
    edge_ratio_tensor = -jnp.ones((num_layers,), dtype=jnp.float32)
    return result[:, 0, :], edge_ratio_tensor


def init_params(key, in_dim, env_dim, act_hidden, out_dim, num_env_layers):
    ks = iter(jax.random.split(key, 64))

    def w(shape):
        return jax.random.normal(next(ks), shape, jnp.float32) * 0.1

    def action_params():
        return {
            "w_root0": w((env_dim, act_hidden)), "w_nb0": w((env_dim, act_hidden)),
            "b0": w((act_hidden,)),
            "w_root1": w((act_hidden, 2)), "w_nb1": w((act_hidden, 2)),
            "b1": w((2,)),
        }

    return {
        "enc_w": w((in_dim, env_dim)), "enc_b": w((env_dim,)),
        "ln_g": jnp.ones((env_dim,), jnp.float32),
        "ln_b": jnp.zeros((env_dim,), jnp.float32),
        "env": [
            {"w_root": w((env_dim, env_dim)), "w_nb": w((env_dim, env_dim)),
             "b": w((env_dim,))}
            for _ in range(num_env_layers)
        ],
        "in_act": action_params(),
        "out_act": action_params(),
        "dec_w": w((env_dim, out_dim)), "dec_b": w((out_dim,)),
    }


if __name__ == "__main__":
    B, N, IN_DIM, ENV_DIM, ACT_HID, OUT_DIM = 8, 16, 8, 32, 16, 4
    NUM_LAYERS = 2  # env_args.num_layers

    root = jax.random.PRNGKey(0)
    kx, ka, kp, kg = jax.random.split(root, 4)

    x = jax.random.normal(kx, (B, N, IN_DIM), jnp.float32)

    # Deterministic per-graph directed edge sets, A[b, dst, src] = 1, no self loops.
    adj = (jax.random.uniform(ka, (B, N, N)) < 0.25).astype(jnp.float32)
    adj = adj * (1.0 - jnp.eye(N, dtype=jnp.float32))

    params = init_params(kp, IN_DIM, ENV_DIM, ACT_HID, OUT_DIM, NUM_LAYERS)
    packed = pack_params(params)        # one-time weight packing, outside the jit

    fwd = jax.jit(functools.partial(
        cognn_forward, num_layers=NUM_LAYERS, tau=1.0, skip=True))
    result, edge_ratio = fwd(packed, x, adj, kg)
    jax.block_until_ready((result, edge_ratio))

    assert result.shape == (B, OUT_DIM)
    assert edge_ratio.shape == (NUM_LAYERS,)
    print("KERNEL_OK")
</pallas_src>

<mosaic_0001>
module attributes {stable_mosaic.version = 11 : i64} {
  func.func @_cognn_fused_kernel(%arg0: i32, %arg1: memref<1x16x8xbf16, #tpu.memory_space<vmem>>, %arg2: memref<1x16x16xbf16, #tpu.memory_space<vmem>>, %arg3: memref<1x2x16x2xf32, #tpu.memory_space<vmem>>, %arg4: memref<8x32xbf16, #tpu.memory_space<vmem>>, %arg5: memref<1x32xf32, #tpu.memory_space<vmem>>, %arg6: memref<1x32xf32, #tpu.memory_space<vmem>>, %arg7: memref<1x32xf32, #tpu.memory_space<vmem>>, %arg8: memref<2x32x32xbf16, #tpu.memory_space<vmem>>, %arg9: memref<2x32x32xbf16, #tpu.memory_space<vmem>>, %arg10: memref<2x1x32xf32, #tpu.memory_space<vmem>>, %arg11: memref<32x32xbf16, #tpu.memory_space<vmem>>, %arg12: memref<32x32xbf16, #tpu.memory_space<vmem>>, %arg13: memref<1x32xf32, #tpu.memory_space<vmem>>, %arg14: memref<32x2xbf16, #tpu.memory_space<vmem>>, %arg15: memref<32x2xbf16, #tpu.memory_space<vmem>>, %arg16: memref<1x2xf32, #tpu.memory_space<vmem>>, %arg17: memref<32x4xbf16, #tpu.memory_space<vmem>>, %arg18: memref<1x4xf32, #tpu.memory_space<vmem>>, %arg19: memref<1x1x4xf32, #tpu.memory_space<vmem>>) attributes {dimension_semantics = [#tpu.dimension_semantics<parallel>], iteration_bounds = array<i64: 8>, scalar_prefetch = 0 : i64, scratch_operands = 0 : i64, tpu.core_type = #tpu.core_type<tc>, window_params = [{transform_indices = @transform_0, window_bounds = array<i64: 1, 16, 8>}, {transform_indices = @transform_1, window_bounds = array<i64: 1, 16, 16>}, {transform_indices = @transform_2, window_bounds = array<i64: 1, 2, 16, 2>}, {pipeline_mode = #tpu.pipeline_mode<synchronous>, transform_indices = @transform_3, window_bounds = array<i64: 8, 32>}, {pipeline_mode = #tpu.pipeline_mode<synchronous>, transform_indices = @transform_4, window_bounds = array<i64: 1, 32>}, {pipeline_mode = #tpu.pipeline_mode<synchronous>, transform_indices = @transform_5, window_bounds = array<i64: 1, 32>}, {pipeline_mode = #tpu.pipeline_mode<synchronous>, transform_indices = @transform_6, window_bounds = array<i64: 1, 32>}, {pipeline_mode = #tpu.pipeline_mode<synchronous>, transform_indices = @transform_7, window_bounds = array<i64: 2, 32, 32>}, {pipeline_mode = #tpu.pipeline_mode<synchronous>, transform_indices = @transform_8, window_bounds = array<i64: 2, 32, 32>}, {pipeline_mode = #tpu.pipeline_mode<synchronous>, transform_indices = @transform_9, window_bounds = array<i64: 2, 1, 32>}, {pipeline_mode = #tpu.pipeline_mode<synchronous>, transform_indices = @transform_10, window_bounds = array<i64: 32, 32>}, {pipeline_mode = #tpu.pipeline_mode<synchronous>, transform_indices = @transform_11, window_bounds = array<i64: 32, 32>}, {pipeline_mode = #tpu.pipeline_mode<synchronous>, transform_indices = @transform_12, window_bounds = array<i64: 1, 32>}, {pipeline_mode = #tpu.pipeline_mode<synchronous>, transform_indices = @transform_13, window_bounds = array<i64: 32, 2>}, {pipeline_mode = #tpu.pipeline_mode<synchronous>, transform_indices = @transform_14, window_bounds = array<i64: 32, 2>}, {pipeline_mode = #tpu.pipeline_mode<synchronous>, transform_indices = @transform_15, window_bounds = array<i64: 1, 2>}, {pipeline_mode = #tpu.pipeline_mode<synchronous>, transform_indices = @transform_16, window_bounds = array<i64: 32, 4>}, {pipeline_mode = #tpu.pipeline_mode<synchronous>, transform_indices = @transform_17, window_bounds = array<i64: 1, 4>}, {transform_indices = @transform_18, window_bounds = array<i64: 1, 1, 4>}]} {
    %c0 = arith.constant 0 : index
    %c0_0 = arith.constant 0 : index
    %c0_1 = arith.constant 0 : index
    %0 = vector.load %arg2[%c0, %c0_0, %c0_1] : memref<1x16x16xbf16, #tpu.memory_space<vmem>>, vector<1x16x16xbf16>
    %1 = vector.shape_cast %0 : vector<1x16x16xbf16> to vector<16x16xbf16>
    %c0_2 = arith.constant 0 : index
    %c0_3 = arith.constant 0 : index
    %c0_4 = arith.constant 0 : index
    %c0_5 = arith.constant 0 : index
    %2 = vector.load %arg3[%c0_2, %c0_3, %c0_4, %c0_5] : memref<1x2x16x2xf32, #tpu.memory_space<vmem>>, vector<1x2x16x2xf32>
    %3 = vector.shape_cast %2 : vector<1x2x16x2xf32> to vector<2x16x2xf32>
    %c0_6 = arith.constant 0 : index
    %c0_7 = arith.constant 0 : index
    %4 = vector.load %arg6[%c0_6, %c0_7] : memref<1x32xf32, #tpu.memory_space<vmem>>, vector<1x32xf32>
    %c0_8 = arith.constant 0 : index
    %c0_9 = arith.constant 0 : index
    %5 = vector.load %arg7[%c0_8, %c0_9] : memref<1x32xf32, #tpu.memory_space<vmem>>, vector<1x32xf32>
    %c0_10 = arith.constant 0 : index
    %c0_11 = arith.constant 0 : index
    %c0_12 = arith.constant 0 : index
    %6 = vector.load %arg1[%c0_10, %c0_11, %c0_12] : memref<1x16x8xbf16, #tpu.memory_space<vmem>>, vector<1x16x8xbf16>
    %7 = vector.shape_cast %6 : vector<1x16x8xbf16> to vector<16x8xbf16>
    %c0_13 = arith.constant 0 : index
    %c0_14 = arith.constant 0 : index
    %8 = vector.load %arg4[%c0_13, %c0_14] : memref<8x32xbf16, #tpu.memory_space<vmem>>, vector<8x32xbf16>
    %cst = arith.constant dense<0.000000e+00> : vector<16x32xf32>
    %9 = tpu.matmul %7, %8, %cst {dimension_numbers = #tpu.dot_dimension_numbers<[1], [0], [0], [1], [0, 0, 1, 1], [], []>} : vector<16x8xbf16>, vector<8x32xbf16>, vector<16x32xf32> -> vector<16x32xf32>
    %c0_15 = arith.constant 0 : index
    %c0_16 = arith.constant 0 : index
    %10 = vector.load %arg5[%c0_15, %c0_16] : memref<1x32xf32, #tpu.memory_space<vmem>>, vector<1x32xf32>
    %11 = vector.broadcast %10 : vector<1x32xf32> to vector<16x32xf32>
    %12 = arith.addf %9, %11 : vector<16x32xf32>
    %cst_17 = arith.constant 0.000000e+00 : f32
    %13 = vector.broadcast %cst_17 : f32 to vector<16x32xf32>
    %14 = arith.maximumf %12, %13 : vector<16x32xf32>
    %cst_18 = arith.constant dense<0.000000e+00> : vector<16xf32>
    %15 = vector.multi_reduction <add>, %14, %cst_18 [1] : vector<16x32xf32> to vector<16xf32>
    %16 = vector.shape_cast %15 : vector<16xf32> to vector<16x1xf32>
    %cst_19 = arith.constant 3.200000e+01 : f32
    %17 = vector.broadcast %cst_19 : f32 to vector<16x1xf32>
    %18 = arith.divf %16, %17 : vector<16x1xf32>
    %19 = vector.broadcast %18 : vector<16x1xf32> to vector<16x32xf32>
    %20 = arith.subf %14, %19 : vector<16x32xf32>
    %21 = arith.mulf %20, %20 : vector<16x32xf32>
    %cst_20 = arith.constant dense<0.000000e+00> : vector<16xf32>
    %22 = vector.multi_reduction <add>, %21, %cst_20 [1] : vector<16x32xf32> to vector<16xf32>
    %23 = vector.shape_cast %22 : vector<16xf32> to vector<16x1xf32>
    %cst_21 = arith.constant 3.200000e+01 : f32
    %24 = vector.broadcast %cst_21 : f32 to vector<16x1xf32>
    %25 = arith.divf %23, %24 : vector<16x1xf32>
    %cst_22 = arith.constant 9.99999974E-6 : f32
    %26 = vector.broadcast %cst_22 : f32 to vector<16x1xf32>
    %27 = arith.addf %25, %26 : vector<16x1xf32>
    %28 = math.rsqrt %27 : vector<16x1xf32>
    %29 = vector.broadcast %28 : vector<16x1xf32> to vector<16x32xf32>
    %30 = arith.mulf %20, %29 : vector<16x32xf32>
    %31 = vector.broadcast %4 : vector<1x32xf32> to vector<16x32xf32>
    %32 = arith.mulf %30, %31 : vector<16x32xf32>
    %33 = vector.broadcast %5 : vector<1x32xf32> to vector<16x32xf32>
    %34 = arith.addf %32, %33 : vector<16x32xf32>
    %35 = arith.truncf %34 : vector<16x32xf32> to vector<16x32xbf16>
    %cst_23 = arith.constant dense<0.000000e+00> : vector<16x32xf32>
    %36 = tpu.matmul %1, %35, %cst_23 {dimension_numbers = #tpu.dot_dimension_numbers<[1], [0], [0], [1], [0, 0, 1, 1], [], []>} : vector<16x16xbf16>, vector<16x32xbf16>, vector<16x32xf32> -> vector<16x32xf32>
    %c0_24 = arith.constant 0 : index
    %c0_25 = arith.constant 0 : index
    %37 = vector.load %arg11[%c0_24, %c0_25] : memref<32x32xbf16, #tpu.memory_space<vmem>>, vector<32x32xbf16>
    %cst_26 = arith.constant dense<0.000000e+00> : vector<16x32xf32>
    %38 = tpu.matmul %35, %37, %cst_26 {dimension_numbers = #tpu.dot_dimension_numbers<[1], [0], [0], [1], [0, 0, 1, 1], [], []>} : vector<16x32xbf16>, vector<32x32xbf16>, vector<16x32xf32> -> vector<16x32xf32>
    %39 = arith.truncf %36 : vector<16x32xf32> to vector<16x32xbf16>
    %c0_27 = arith.constant 0 : index
    %c0_28 = arith.constant 0 : index
    %40 = vector.load %arg12[%c0_27, %c0_28] : memref<32x32xbf16, #tpu.memory_space<vmem>>, vector<32x32xbf16>
    %cst_29 = arith.constant dense<0.000000e+00> : vector<16x32xf32>
    %41 = tpu.matmul %39, %40, %cst_29 {dimension_numbers = #tpu.dot_dimension_numbers<[1], [0], [0], [1], [0, 0, 1, 1], [], []>} : vector<16x32xbf16>, vector<32x32xbf16>, vector<16x32xf32> -> vector<16x32xf32>
    %42 = arith.addf %38, %41 : vector<16x32xf32>
    %c0_30 = arith.constant 0 : index
    %c0_31 = arith.constant 0 : index
    %43 = vector.load %arg13[%c0_30, %c0_31] : memref<1x32xf32, #tpu.memory_space<vmem>>, vector<1x32xf32>
    %44 = vector.broadcast %43 : vector<1x32xf32> to vector<16x32xf32>
    %45 = arith.addf %42, %44 : vector<16x32xf32>
    %cst_32 = arith.constant 0.000000e+00 : f32
    %46 = vector.broadcast %cst_32 : f32 to vector<16x32xf32>
    %47 = arith.maximumf %45, %46 : vector<16x32xf32>
    %48 = arith.truncf %47 : vector<16x32xf32> to vector<16x32xbf16>
    %c0_33 = arith.constant 0 : index
    %c0_34 = arith.constant 0 : index
    %49 = vector.load %arg15[%c0_33, %c0_34] : memref<32x2xbf16, #tpu.memory_space<vmem>>, vector<32x2xbf16>
    %cst_35 = arith.constant dense<0.000000e+00> : vector<16x2xf32>
    %50 = tpu.matmul %48, %49, %cst_35 {dimension_numbers = #tpu.dot_dimension_numbers<[1], [0], [0], [1], [0, 0, 1, 1], [], []>} : vector<16x32xbf16>, vector<32x2xbf16>, vector<16x2xf32> -> vector<16x2xf32>
    %c0_36 = arith.constant 0 : index
    %c0_37 = arith.constant 0 : index
    %51 = vector.load %arg14[%c0_36, %c0_37] : memref<32x2xbf16, #tpu.memory_space<vmem>>, vector<32x2xbf16>
    %cst_38 = arith.constant dense<0.000000e+00> : vector<16x2xf32>
    %52 = tpu.matmul %48, %51, %cst_38 {dimension_numbers = #tpu.dot_dimension_numbers<[1], [0], [0], [1], [0, 0, 1, 1], [], []>} : vector<16x32xbf16>, vector<32x2xbf16>, vector<16x2xf32> -> vector<16x2xf32>
    %53 = arith.truncf %50 : vector<16x2xf32> to vector<16x2xbf16>
    %cst_39 = arith.constant dense<0.000000e+00> : vector<16x2xf32>
    %54 = tpu.matmul %1, %53, %cst_39 {dimension_numbers = #tpu.dot_dimension_numbers<[1], [0], [0], [1], [0, 0, 1, 1], [], []>} : vector<16x16xbf16>, vector<16x2xbf16>, vector<16x2xf32> -> vector<16x2xf32>
    %55 = arith.addf %52, %54 : vector<16x2xf32>
    %c0_40 = arith.constant 0 : index
    %c0_41 = arith.constant 0 : index
    %56 = vector.load %arg16[%c0_40, %c0_41] : memref<1x2xf32, #tpu.memory_space<vmem>>, vector<1x2xf32>
    %57 = vector.broadcast %56 : vector<1x2xf32> to vector<16x2xf32>
    %58 = arith.addf %55, %57 : vector<16x2xf32>
    %59 = vector.extract_strided_slice %3 {offsets = [0, 0, 0], sizes = [1, 16, 2], strides = [1, 1, 1]} : vector<2x16x2xf32> to vector<1x16x2xf32>
    %60 = vector.shape_cast %59 : vector<1x16x2xf32> to vector<16x2xf32>
    %61 = arith.addf %58, %60 : vector<16x2xf32>
    %cst_42 = arith.constant 0.000000e+00 : f32
    %62 = vector.broadcast %cst_42 : f32 to vector<16x2xf32>
    %63 = arith.cmpf oge, %61, %62 : vector<16x2xf32>
    %64 = arith.extui %63 : vector<16x2xi1> to vector<16x2xi32>
    %65 = arith.sitofp %64 : vector<16x2xi32> to vector<16x2xf32>
    %66 = vector.extract_strided_slice %65 {offsets = [0, 0], sizes = [16, 1], strides = [1, 1]} : vector<16x2xf32> to vector<16x1xf32>
    %67 = vector.extract_strided_slice %65 {offsets = [0, 1], sizes = [16, 1], strides = [1, 1]} : vector<16x2xf32> to vector<16x1xf32>
    %68 = vector.broadcast %67 : vector<16x1xf32> to vector<16x32xf32>
    %69 = arith.mulf %68, %34 : vector<16x32xf32>
    %70 = arith.truncf %69 : vector<16x32xf32> to vector<16x32xbf16>
    %cst_43 = arith.constant dense<0.000000e+00> : vector<16x32xf32>
    %71 = tpu.matmul %1, %70, %cst_43 {dimension_numbers = #tpu.dot_dimension_numbers<[1], [0], [0], [1], [0, 0, 1, 1], [], []>} : vector<16x16xbf16>, vector<16x32xbf16>, vector<16x32xf32> -> vector<16x32xf32>
    %72 = vector.broadcast %66 : vector<16x1xf32> to vector<16x32xf32>
    %73 = arith.mulf %72, %71 : vector<16x32xf32>
    %c0_44 = arith.constant 0 : index
    %c0_45 = arith.constant 0 : index
    %c0_46 = arith.constant 0 : index
    %74 = vector.load %arg8[%c0_44, %c0_45, %c0_46] : memref<2x32x32xbf16, #tpu.memory_space<vmem>>, vector<1x32x32xbf16>
    %75 = vector.shape_cast %74 : vector<1x32x32xbf16> to vector<32x32xbf16>
    %cst_47 = arith.constant dense<0.000000e+00> : vector<16x32xf32>
    %76 = tpu.matmul %35, %75, %cst_47 {dimension_numbers = #tpu.dot_dimension_numbers<[1], [0], [0], [1], [0, 0, 1, 1], [], []>} : vector<16x32xbf16>, vector<32x32xbf16>, vector<16x32xf32> -> vector<16x32xf32>
    %77 = arith.truncf %73 : vector<16x32xf32> to vector<16x32xbf16>
    %c0_48 = arith.constant 0 : index
    %c0_49 = arith.constant 0 : index
    %c0_50 = arith.constant 0 : index
    %78 = vector.load %arg9[%c0_48, %c0_49, %c0_50] : memref<2x32x32xbf16, #tpu.memory_space<vmem>>, vector<1x32x32xbf16>
    %79 = vector.shape_cast %78 : vector<1x32x32xbf16> to vector<32x32xbf16>
    %cst_51 = arith.constant dense<0.000000e+00> : vector<16x32xf32>
    %80 = tpu.matmul %77, %79, %cst_51 {dimension_numbers = #tpu.dot_dimension_numbers<[1], [0], [0], [1], [0, 0, 1, 1], [], []>} : vector<16x32xbf16>, vector<32x32xbf16>, vector<16x32xf32> -> vector<16x32xf32>
    %81 = arith.addf %76, %80 : vector<16x32xf32>
    %c0_52 = arith.constant 0 : index
    %c0_53 = arith.constant 0 : index
    %c0_54 = arith.constant 0 : index
    %82 = vector.load %arg10[%c0_52, %c0_53, %c0_54] : memref<2x1x32xf32, #tpu.memory_space<vmem>>, vector<1x1x32xf32>
    %83 = vector.shape_cast %82 : vector<1x1x32xf32> to vector<1x32xf32>
    %84 = vector.broadcast %83 : vector<1x32xf32> to vector<16x32xf32>
    %85 = arith.addf %81, %84 : vector<16x32xf32>
    %cst_55 = arith.constant 0.000000e+00 : f32
    %86 = vector.broadcast %cst_55 : f32 to vector<16x32xf32>
    %87 = arith.maximumf %85, %86 : vector<16x32xf32>
    %88 = arith.addf %34, %87 : vector<16x32xf32>
    %cst_56 = arith.constant dense<0.000000e+00> : vector<16xf32>
    %89 = vector.multi_reduction <add>, %88, %cst_56 [1] : vector<16x32xf32> to vector<16xf32>
    %90 = vector.shape_cast %89 : vector<16xf32> to vector<16x1xf32>
    %cst_57 = arith.constant 3.200000e+01 : f32
    %91 = vector.broadcast %cst_57 : f32 to vector<16x1xf32>
    %92 = arith.divf %90, %91 : vector<16x1xf32>
    %93 = vector.broadcast %92 : vector<16x1xf32> to vector<16x32xf32>
    %94 = arith.subf %88, %93 : vector<16x32xf32>
    %95 = arith.mulf %94, %94 : vector<16x32xf32>
    %cst_58 = arith.constant dense<0.000000e+00> : vector<16xf32>
    %96 = vector.multi_reduction <add>, %95, %cst_58 [1] : vector<16x32xf32> to vector<16xf32>
    %97 = vector.shape_cast %96 : vector<16xf32> to vector<16x1xf32>
    %cst_59 = arith.constant 3.200000e+01 : f32
    %98 = vector.broadcast %cst_59 : f32 to vector<16x1xf32>
    %99 = arith.divf %97, %98 : vector<16x1xf32>
    %cst_60 = arith.constant 9.99999974E-6 : f32
    %100 = vector.broadcast %cst_60 : f32 to vector<16x1xf32>
    %101 = arith.addf %99, %100 : vector<16x1xf32>
    %102 = math.rsqrt %101 : vector<16x1xf32>
    %103 = vector.broadcast %102 : vector<16x1xf32> to vector<16x32xf32>
    %104 = arith.mulf %94, %103 : vector<16x32xf32>
    %105 = vector.broadcast %4 : vector<1x32xf32> to vector<16x32xf32>
    %106 = arith.mulf %104, %105 : vector<16x32xf32>
    %107 = vector.broadcast %5 : vector<1x32xf32> to vector<16x32xf32>
    %108 = arith.addf %106, %107 : vector<16x32xf32>
    %109 = arith.truncf %108 : vector<16x32xf32> to vector<16x32xbf16>
    %cst_61 = arith.constant dense<0.000000e+00> : vector<16x32xf32>
    %110 = tpu.matmul %1, %109, %cst_61 {dimension_numbers = #tpu.dot_dimension_numbers<[1], [0], [0], [1], [0, 0, 1, 1], [], []>} : vector<16x16xbf16>, vector<16x32xbf16>, vector<16x32xf32> -> vector<16x32xf32>
    %c0_62 = arith.constant 0 : index
    %c0_63 = arith.constant 0 : index
    %111 = vector.load %arg11[%c0_62, %c0_63] : memref<32x32xbf16, #tpu.memory_space<vmem>>, vector<32x32xbf16>
    %cst_64 = arith.constant dense<0.000000e+00> : vector<16x32xf32>
    %112 = tpu.matmul %109, %111, %cst_64 {dimension_numbers = #tpu.dot_dimension_numbers<[1], [0], [0], [1], [0, 0, 1, 1], [], []>} : vector<16x32xbf16>, vector<32x32xbf16>, vector<16x32xf32> -> vector<16x32xf32>
    %113 = arith.truncf %110 : vector<16x32xf32> to vector<16x32xbf16>
    %c0_65 = arith.constant 0 : index
    %c0_66 = arith.constant 0 : index
    %114 = vector.load %arg12[%c0_65, %c0_66] : memref<32x32xbf16, #tpu.memory_space<vmem>>, vector<32x32xbf16>
    %cst_67 = arith.constant dense<0.000000e+00> : vector<16x32xf32>
    %115 = tpu.matmul %113, %114, %cst_67 {dimension_numbers = #tpu.dot_dimension_numbers<[1], [0], [0], [1], [0, 0, 1, 1], [], []>} : vector<16x32xbf16>, vector<32x32xbf16>, vector<16x32xf32> -> vector<16x32xf32>
    %116 = arith.addf %112, %115 : vector<16x32xf32>
    %c0_68 = arith.constant 0 : index
    %c0_69 = arith.constant 0 : index
    %117 = vector.load %arg13[%c0_68, %c0_69] : memref<1x32xf32, #tpu.memory_space<vmem>>, vector<1x32xf32>
    %118 = vector.broadcast %117 : vector<1x32xf32> to vector<16x32xf32>
    %119 = arith.addf %116, %118 : vector<16x32xf32>
    %cst_70 = arith.constant 0.000000e+00 : f32
    %120 = vector.broadcast %cst_70 : f32 to vector<16x32xf32>
    %121 = arith.maximumf %119, %120 : vector<16x32xf32>
    %122 = arith.truncf %121 : vector<16x32xf32> to vector<16x32xbf16>
    %c0_71 = arith.constant 0 : index
    %c0_72 = arith.constant 0 : index
    %123 = vector.load %arg15[%c0_71, %c0_72] : memref<32x2xbf16, #tpu.memory_space<vmem>>, vector<32x2xbf16>
    %cst_73 = arith.constant dense<0.000000e+00> : vector<16x2xf32>
    %124 = tpu.matmul %122, %123, %cst_73 {dimension_numbers = #tpu.dot_dimension_numbers<[1], [0], [0], [1], [0, 0, 1, 1], [], []>} : vector<16x32xbf16>, vector<32x2xbf16>, vector<16x2xf32> -> vector<16x2xf32>
    %c0_74 = arith.constant 0 : index
    %c0_75 = arith.constant 0 : index
    %125 = vector.load %arg14[%c0_74, %c0_75] : memref<32x2xbf16, #tpu.memory_space<vmem>>, vector<32x2xbf16>
    %cst_76 = arith.constant dense<0.000000e+00> : vector<16x2xf32>
    %126 = tpu.matmul %122, %125, %cst_76 {dimension_numbers = #tpu.dot_dimension_numbers<[1], [0], [0], [1], [0, 0, 1, 1], [], []>} : vector<16x32xbf16>, vector<32x2xbf16>, vector<16x2xf32> -> vector<16x2xf32>
    %127 = arith.truncf %124 : vector<16x2xf32> to vector<16x2xbf16>
    %cst_77 = arith.constant dense<0.000000e+00> : vector<16x2xf32>
    %128 = tpu.matmul %1, %127, %cst_77 {dimension_numbers = #tpu.dot_dimension_numbers<[1], [0], [0], [1], [0, 0, 1, 1], [], []>} : vector<16x16xbf16>, vector<16x2xbf16>, vector<16x2xf32> -> vector<16x2xf32>
    %129 = arith.addf %126, %128 : vector<16x2xf32>
    %c0_78 = arith.constant 0 : index
    %c0_79 = arith.constant 0 : index
    %130 = vector.load %arg16[%c0_78, %c0_79] : memref<1x2xf32, #tpu.memory_space<vmem>>, vector<1x2xf32>
    %131 = vector.broadcast %130 : vector<1x2xf32> to vector<16x2xf32>
    %132 = arith.addf %129, %131 : vector<16x2xf32>
    %133 = vector.extract_strided_slice %3 {offsets = [1, 0, 0], sizes = [1, 16, 2], strides = [1, 1, 1]} : vector<2x16x2xf32> to vector<1x16x2xf32>
    %134 = vector.shape_cast %133 : vector<1x16x2xf32> to vector<16x2xf32>
    %135 = arith.addf %132, %134 : vector<16x2xf32>
    %cst_80 = arith.constant 0.000000e+00 : f32
    %136 = vector.broadcast %cst_80 : f32 to vector<16x2xf32>
    %137 = arith.cmpf oge, %135, %136 : vector<16x2xf32>
    %138 = arith.extui %137 : vector<16x2xi1> to vector<16x2xi32>
    %139 = arith.sitofp %138 : vector<16x2xi32> to vector<16x2xf32>
    %140 = vector.extract_strided_slice %139 {offsets = [0, 0], sizes = [16, 1], strides = [1, 1]} : vector<16x2xf32> to vector<16x1xf32>
    %141 = vector.extract_strided_slice %139 {offsets = [0, 1], sizes = [16, 1], strides = [1, 1]} : vector<16x2xf32> to vector<16x1xf32>
    %142 = vector.broadcast %141 : vector<16x1xf32> to vector<16x32xf32>
    %143 = arith.mulf %142, %108 : vector<16x32xf32>
    %144 = arith.truncf %143 : vector<16x32xf32> to vector<16x32xbf16>
    %cst_81 = arith.constant dense<0.000000e+00> : vector<16x32xf32>
    %145 = tpu.matmul %1, %144, %cst_81 {dimension_numbers = #tpu.dot_dimension_numbers<[1], [0], [0], [1], [0, 0, 1, 1], [], []>} : vector<16x16xbf16>, vector<16x32xbf16>, vector<16x32xf32> -> vector<16x32xf32>
    %146 = vector.broadcast %140 : vector<16x1xf32> to vector<16x32xf32>
    %147 = arith.mulf %146, %145 : vector<16x32xf32>
    %c1 = arith.constant 1 : index
    %c0_82 = arith.constant 0 : index
    %c0_83 = arith.constant 0 : index
    %148 = vector.load %arg8[%c1, %c0_82, %c0_83] : memref<2x32x32xbf16, #tpu.memory_space<vmem>>, vector<1x32x32xbf16>
    %149 = vector.shape_cast %148 : vector<1x32x32xbf16> to vector<32x32xbf16>
    %cst_84 = arith.constant dense<0.000000e+00> : vector<16x32xf32>
    %150 = tpu.matmul %109, %149, %cst_84 {dimension_numbers = #tpu.dot_dimension_numbers<[1], [0], [0], [1], [0, 0, 1, 1], [], []>} : vector<16x32xbf16>, vector<32x32xbf16>, vector<16x32xf32> -> vector<16x32xf32>
    %151 = arith.truncf %147 : vector<16x32xf32> to vector<16x32xbf16>
    %c1_85 = arith.constant 1 : index
    %c0_86 = arith.constant 0 : index
    %c0_87 = arith.constant 0 : index
    %152 = vector.load %arg9[%c1_85, %c0_86, %c0_87] : memref<2x32x32xbf16, #tpu.memory_space<vmem>>, vector<1x32x32xbf16>
    %153 = vector.shape_cast %152 : vector<1x32x32xbf16> to vector<32x32xbf16>
    %cst_88 = arith.constant dense<0.000000e+00> : vector<16x32xf32>
    %154 = tpu.matmul %151, %153, %cst_88 {dimension_numbers = #tpu.dot_dimension_numbers<[1], [0], [0], [1], [0, 0, 1, 1], [], []>} : vector<16x32xbf16>, vector<32x32xbf16>, vector<16x32xf32> -> vector<16x32xf32>
    %155 = arith.addf %150, %154 : vector<16x32xf32>
    %c1_89 = arith.constant 1 : index
    %c0_90 = arith.constant 0 : index
    %c0_91 = arith.constant 0 : index
    %156 = vector.load %arg10[%c1_89, %c0_90, %c0_91] : memref<2x1x32xf32, #tpu.memory_space<vmem>>, vector<1x1x32xf32>
    %157 = vector.shape_cast %156 : vector<1x1x32xf32> to vector<1x32xf32>
    %158 = vector.broadcast %157 : vector<1x32xf32> to vector<16x32xf32>
    %159 = arith.addf %155, %158 : vector<16x32xf32>
    %cst_92 = arith.constant 0.000000e+00 : f32
    %160 = vector.broadcast %cst_92 : f32 to vector<16x32xf32>
    %161 = arith.maximumf %159, %160 : vector<16x32xf32>
    %162 = arith.addf %108, %161 : vector<16x32xf32>
    %cst_93 = arith.constant dense<0.000000e+00> : vector<16xf32>
    %163 = vector.multi_reduction <add>, %162, %cst_93 [1] : vector<16x32xf32> to vector<16xf32>
    %164 = vector.shape_cast %163 : vector<16xf32> to vector<16x1xf32>
    %cst_94 = arith.constant 3.200000e+01 : f32
    %165 = vector.broadcast %cst_94 : f32 to vector<16x1xf32>
    %166 = arith.divf %164, %165 : vector<16x1xf32>
    %167 = vector.broadcast %166 : vector<16x1xf32> to vector<16x32xf32>
    %168 = arith.subf %162, %167 : vector<16x32xf32>
    %169 = arith.mulf %168, %168 : vector<16x32xf32>
    %cst_95 = arith.constant dense<0.000000e+00> : vector<16xf32>
    %170 = vector.multi_reduction <add>, %169, %cst_95 [1] : vector<16x32xf32> to vector<16xf32>
    %171 = vector.shape_cast %170 : vector<16xf32> to vector<16x1xf32>
    %cst_96 = arith.constant 3.200000e+01 : f32
    %172 = vector.broadcast %cst_96 : f32 to vector<16x1xf32>
    %173 = arith.divf %171, %172 : vector<16x1xf32>
    %cst_97 = arith.constant 9.99999974E-6 : f32
    %174 = vector.broadcast %cst_97 : f32 to vector<16x1xf32>
    %175 = arith.addf %173, %174 : vector<16x1xf32>
    %176 = math.rsqrt %175 : vector<16x1xf32>
    %177 = vector.broadcast %176 : vector<16x1xf32> to vector<16x32xf32>
    %178 = arith.mulf %168, %177 : vector<16x32xf32>
    %179 = vector.broadcast %4 : vector<1x32xf32> to vector<16x32xf32>
    %180 = arith.mulf %178, %179 : vector<16x32xf32>
    %181 = vector.broadcast %5 : vector<1x32xf32> to vector<16x32xf32>
    %182 = arith.addf %180, %181 : vector<16x32xf32>
    %cst_98 = arith.constant dense<0.000000e+00> : vector<32xf32>
    %183 = vector.multi_reduction <add>, %182, %cst_98 [0] : vector<16x32xf32> to vector<32xf32>
    %184 = vector.shape_cast %183 : vector<32xf32> to vector<1x32xf32>
    %cst_99 = arith.constant 1.600000e+01 : f32
    %185 = vector.broadcast %cst_99 : f32 to vector<1x32xf32>
    %186 = arith.divf %184, %185 : vector<1x32xf32>
    %187 = arith.truncf %186 : vector<1x32xf32> to vector<1x32xbf16>
    %c0_100 = arith.constant 0 : index
    %c0_101 = arith.constant 0 : index
    %188 = vector.load %arg17[%c0_100, %c0_101] : memref<32x4xbf16, #tpu.memory_space<vmem>>, vector<32x4xbf16>
    %cst_102 = arith.constant dense<0.000000e+00> : vector<1x4xf32>
    %189 = tpu.matmul %187, %188, %cst_102 {dimension_numbers = #tpu.dot_dimension_numbers<[1], [0], [0], [1], [0, 0, 1, 1], [], []>} : vector<1x32xbf16>, vector<32x4xbf16>, vector<1x4xf32> -> vector<1x4xf32>
    %c0_103 = arith.constant 0 : index
    %c0_104 = arith.constant 0 : index
    %190 = vector.load %arg18[%c0_103, %c0_104] : memref<1x4xf32, #tpu.memory_space<vmem>>, vector<1x4xf32>
    %191 = arith.addf %189, %190 : vector<1x4xf32>
    %c0_105 = arith.constant 0 : index
    %c0_106 = arith.constant 0 : index
    %c0_107 = arith.constant 0 : index
    %192 = vector.load %arg19[%c0_105, %c0_106, %c0_107] : memref<1x1x4xf32, #tpu.memory_space<vmem>>, vector<1x1x4xf32>
    %193 = vector.shape_cast %192 : vector<1x1x4xf32> to vector<1x4xf32>
    %194 = vector.shape_cast %191 : vector<1x4xf32> to vector<1x1x4xf32>
    tpu.vector_store %arg19[%c0_105, %c0_106, %c0_107], %194 {strides = array<i32>} : memref<1x1x4xf32, #tpu.memory_space<vmem>>, vector<1x1x4xf32>,
    return
  }
  func.func @transform_0(%arg0: i32) -> (i32, i32, i32) {
    %c0_i32 = arith.constant 0 : i32
    %c0_i32_0 = arith.constant 0 : i32
    %c0_i32_1 = arith.constant 0 : i32
    return %arg0, %c0_i32, %c0_i32_0 : i32, i32, i32
  }
  func.func @transform_1(%arg0: i32) -> (i32, i32, i32) {
    %c0_i32 = arith.constant 0 : i32
    %c0_i32_0 = arith.constant 0 : i32
    %c0_i32_1 = arith.constant 0 : i32
    return %arg0, %c0_i32, %c0_i32_0 : i32, i32, i32
  }
  func.func @transform_2(%arg0: i32) -> (i32, i32, i32, i32) {
    %c0_i32 = arith.constant 0 : i32
    %c0_i32_0 = arith.constant 0 : i32
    %c0_i32_1 = arith.constant 0 : i32
    %c0_i32_2 = arith.constant 0 : i32
    return %arg0, %c0_i32, %c0_i32_0, %c0_i32_1 : i32, i32, i32, i32
  }
  func.func @transform_3(%arg0: i32) -> (i32, i32) {
    %c0_i32 = arith.constant 0 : i32
    %c0_i32_0 = arith.constant 0 : i32
    %c0_i32_1 = arith.constant 0 : i32
    return %c0_i32, %c0_i32_0 : i32, i32
  }
  func.func @transform_4(%arg0: i32) -> (i32, i32) {
    %c0_i32 = arith.constant 0 : i32
    %c0_i32_0 = arith.constant 0 : i32
    %c0_i32_1 = arith.constant 0 : i32
    return %c0_i32, %c0_i32_0 : i32, i32
  }
  func.func @transform_5(%arg0: i32) -> (i32, i32) {
    %c0_i32 = arith.constant 0 : i32
    %c0_i32_0 = arith.constant 0 : i32
    %c0_i32_1 = arith.constant 0 : i32
    return %c0_i32, %c0_i32_0 : i32, i32
  }
  func.func @transform_6(%arg0: i32) -> (i32, i32) {
    %c0_i32 = arith.constant 0 : i32
    %c0_i32_0 = arith.constant 0 : i32
    %c0_i32_1 = arith.constant 0 : i32
    return %c0_i32, %c0_i32_0 : i32, i32
  }
  func.func @transform_7(%arg0: i32) -> (i32, i32, i32) {
    %c0_i32 = arith.constant 0 : i32
    %c0_i32_0 = arith.constant 0 : i32
    %c0_i32_1 = arith.constant 0 : i32
    %c0_i32_2 = arith.constant 0 : i32
    return %c0_i32, %c0_i32_0, %c0_i32_1 : i32, i32, i32
  }
  func.func @transform_8(%arg0: i32) -> (i32, i32, i32) {
    %c0_i32 = arith.constant 0 : i32
    %c0_i32_0 = arith.constant 0 : i32
    %c0_i32_1 = arith.constant 0 : i32
    %c0_i32_2 = arith.constant 0 : i32
    return %c0_i32, %c0_i32_0, %c0_i32_1 : i32, i32, i32
  }
  func.func @transform_9(%arg0: i32) -> (i32, i32, i32) {
    %c0_i32 = arith.constant 0 : i32
    %c0_i32_0 = arith.constant 0 : i32
    %c0_i32_1 = arith.constant 0 : i32
    %c0_i32_2 = arith.constant 0 : i32
    return %c0_i32, %c0_i32_0, %c0_i32_1 : i32, i32, i32
  }
  func.func @transform_10(%arg0: i32) -> (i32, i32) {
    %c0_i32 = arith.constant 0 : i32
    %c0_i32_0 = arith.constant 0 : i32
    %c0_i32_1 = arith.constant 0 : i32
    return %c0_i32, %c0_i32_0 : i32, i32
  }
  func.func @transform_11(%arg0: i32) -> (i32, i32) {
    %c0_i32 = arith.constant 0 : i32
    %c0_i32_0 = arith.constant 0 : i32
    %c0_i32_1 = arith.constant 0 : i32
    return %c0_i32, %c0_i32_0 : i32, i32
  }
  func.func @transform_12(%arg0: i32) -> (i32, i32) {
    %c0_i32 = arith.constant 0 : i32
    %c0_i32_0 = arith.constant 0 : i32
    %c0_i32_1 = arith.constant 0 : i32
    return %c0_i32, %c0_i32_0 : i32, i32
  }
  func.func @transform_13(%arg0: i32) -> (i32, i32) {
    %c0_i32 = arith.constant 0 : i32
    %c0_i32_0 = arith.constant 0 : i32
    %c0_i32_1 = arith.constant 0 : i32
    return %c0_i32, %c0_i32_0 : i32, i32
  }
  func.func @transform_14(%arg0: i32) -> (i32, i32) {
    %c0_i32 = arith.constant 0 : i32
    %c0_i32_0 = arith.constant 0 : i32
    %c0_i32_1 = arith.constant 0 : i32
    return %c0_i32, %c0_i32_0 : i32, i32
  }
  func.func @transform_15(%arg0: i32) -> (i32, i32) {
    %c0_i32 = arith.constant 0 : i32
    %c0_i32_0 = arith.constant 0 : i32
    %c0_i32_1 = arith.constant 0 : i32
    return %c0_i32, %c0_i32_0 : i32, i32
  }
  func.func @transform_16(%arg0: i32) -> (i32, i32) {
    %c0_i32 = arith.constant 0 : i32
    %c0_i32_0 = arith.constant 0 : i32
    %c0_i32_1 = arith.constant 0 : i32
    return %c0_i32, %c0_i32_0 : i32, i32
  }
  func.func @transform_17(%arg0: i32) -> (i32, i32) {
    %c0_i32 = arith.constant 0 : i32
    %c0_i32_0 = arith.constant 0 : i32
    %c0_i32_1 = arith.constant 0 : i32
    return %c0_i32, %c0_i32_0 : i32, i32
  }
  func.func @transform_18(%arg0: i32) -> (i32, i32, i32) {
    %c0_i32 = arith.constant 0 : i32
    %c0_i32_0 = arith.constant 0 : i32
    %c0_i32_1 = arith.constant 0 : i32
    return %arg0, %c0_i32, %c0_i32_0 : i32, i32, i32
  }
}

</mosaic_0001>

<bundles_post_ra>
// kernel: sub.7
= control target key start
LH: loop header
LB: loop body
LE: loop exit
PB: predicated region body
PF: predicated region fallthrough
CT: control target
= control target key end

     0   :  { %s716_s0 = inlined_call_operand.vmem [shape: f32[8,2,16,2], index: 0, kind: input, shape index: {}]   ;;  %s717_s1 = inlined_call_operand.vmem [shape: f32[8,2,16,2], index: 1, kind: input, shape index: {}]   ;;  %s718_s2 = inlined_call_operand.vmem [shape: f32[8,2,16,2], index: 2, kind: output, shape index: {}]  }
   0x1   :  { %v3_v0 = vld [vmem:[%s716_s0] sm:$0xff]  ;;  %v341_v23 = vld [vmem:[%s716_s0 + $0x10] sm:$0xff]  ;;  %v365_v47 = vld [vmem:[%s716_s0 + $0x8] sm:$0xff] }
   0x2   :  { %v4_v1 = vld [vmem:[%s717_s1] sm:$0xff]  ;;  %v342_v24 = vld [vmem:[%s717_s1 + $0x10] sm:$0xff]  ;;  %v366_v49 = vld [vmem:[%s717_s1 + $0x8] sm:$0xff] }
   0x3   :  { %v320_v2 = vld [vmem:[%s716_s0 + $0x20] sm:$0xff]  ;;  %v7_v3 = vsub.f32 %v3_v0, %v4_v1  ;;  %v86_v26 = vsub.f32 %v341_v23, %v342_v24  ;;  %v344_v27 = vld [vmem:[%s716_s0 + $0x30] sm:$0xff]  ;;  %v368_v50 = vld [vmem:[%s716_s0 + $0x28] sm:$0xff]  ;;  %v166_v52 = vsub.f32 %v365_v47, %v366_v49 }
   0x4   :  { %v321_v4 = vld [vmem:[%s717_s1 + $0x20] sm:$0xff]  ;;  %v345_v28 = vld [vmem:[%s717_s1 + $0x30] sm:$0xff]  ;;  %v369_v51 = vld [vmem:[%s717_s1 + $0x28] sm:$0xff] }
   0x5   :  { %v323_v5 = vld [vmem:[%s716_s0 + $0x40] sm:$0xff]  ;;  %v16_v7 = vsub.f32 %v320_v2, %v321_v4  ;;  %9 = vst [vmem:[%s718_s2] sm:$0xff] %v7_v3  ;;  %v347_v29 = vld [vmem:[%s716_s0 + $0x50] sm:$0xff]  ;;  %v96_v30 = vsub.f32 %v344_v27, %v345_v28  ;;  %343 = vst [vmem:[%s718_s2 + $0x10] sm:$0xff] %v86_v26  ;;  %v176_v53 = vsub.f32 %v368_v50, %v369_v51 }
   0x6   :  { %v324_v6 = vld [vmem:[%s717_s1 + $0x40] sm:$0xff]  ;;  %v348_v31 = vld [vmem:[%s717_s1 + $0x50] sm:$0xff]  ;;  %v371_v54 = vld [vmem:[%s716_s0 + $0x48] sm:$0xff]  ;;  %367 = vst [vmem:[%s718_s2 + $0x8] sm:$0xff] %v166_v52 }
   0x7   :  { %v26_v8 = vsub.f32 %v323_v5, %v324_v6  ;;  %v326_v9 = vld [vmem:[%s716_s0 + $0x60] sm:$0xff]  ;;  %322 = vst [vmem:[%s718_s2 + $0x20] sm:$0xff] %v16_v7  ;;  %v350_v32 = vld [vmem:[%s716_s0 + $0x70] sm:$0xff]  ;;  %v106_v34 = vsub.f32 %v347_v29, %v348_v31  ;;  %346 = vst [vmem:[%s718_s2 + $0x30] sm:$0xff] %v96_v30 }
   0x8   :  { %v327_v10 = vld [vmem:[%s717_s1 + $0x60] sm:$0xff]  ;;  %v351_v33 = vld [vmem:[%s717_s1 + $0x70] sm:$0xff]  ;;  %v372_v55 = vld [vmem:[%s717_s1 + $0x48] sm:$0xff]  ;;  %370 = vst [vmem:[%s718_s2 + $0x28] sm:$0xff] %v176_v53 }
   0x9   :  { %v329_v11 = vld [vmem:[%s716_s0 + $0x80] sm:$0xff]  ;;  %v36_v12 = vsub.f32 %v326_v9, %v327_v10  ;;  %325 = vst [vmem:[%s718_s2 + $0x40] sm:$0xff] %v26_v8  ;;  %v116_v35 = vsub.f32 %v350_v32, %v351_v33  ;;  %v353_v36 = vld [vmem:[%s716_s0 + $0x90] sm:$0xff]  ;;  %349 = vst [vmem:[%s718_s2 + $0x50] sm:$0xff] %v106_v34  ;;  %v186_v57 = vsub.f32 %v371_v54, %v372_v55 }
   0xa   :  { %v330_v13 = vld [vmem:[%s717_s1 + $0x80] sm:$0xff]  ;;  %v354_v37 = vld [vmem:[%s717_s1 + $0x90] sm:$0xff]  ;;  %v374_v56 = vld [vmem:[%s716_s0 + $0x68] sm:$0xff] }
   0xb   :  { %v332_v14 = vld [vmem:[%s716_s0 + $0xa0] sm:$0xff]  ;;  %v46_v16 = vsub.f32 %v329_v11, %v330_v13  ;;  %328 = vst [vmem:[%s718_s2 + $0x60] sm:$0xff] %v36_v12  ;;  %v356_v38 = vld [vmem:[%s716_s0 + $0xb0] sm:$0xff]  ;;  %v126_v39 = vsub.f32 %v353_v36, %v354_v37  ;;  %352 = vst [vmem:[%s718_s2 + $0x70] sm:$0xff] %v116_v35 }
   0xc   :  { %v333_v15 = vld [vmem:[%s717_s1 + $0xa0] sm:$0xff]  ;;  %v357_v40 = vld [vmem:[%s717_s1 + $0xb0] sm:$0xff]  ;;  %v375_v58 = vld [vmem:[%s717_s1 + $0x68] sm:$0xff]  ;;  %373 = vst [vmem:[%s718_s2 + $0x48] sm:$0xff] %v186_v57 }
   0xd   :  { %v56_v17 = vsub.f32 %v332_v14, %v333_v15  ;;  %v335_v18 = vld [vmem:[%s716_s0 + $0xc0] sm:$0xff]  ;;  %331 = vst [vmem:[%s718_s2 + $0x80] sm:$0xff] %v46_v16  ;;  %v359_v41 = vld [vmem:[%s716_s0 + $0xd0] sm:$0xff]  ;;  %v136_v43 = vsub.f32 %v356_v38, %v357_v40  ;;  %355 = vst [vmem:[%s718_s2 + $0x90] sm:$0xff] %v126_v39  ;;  %v196_v61 = vsub.f32 %v374_v56, %v375_v58 }
   0xe   :  { %v336_v19 = vld [vmem:[%s717_s1 + $0xc0] sm:$0xff]  ;;  %v360_v42 = vld [vmem:[%s717_s1 + $0xd0] sm:$0xff]  ;;  %v377_v59 = vld [vmem:[%s716_s0 + $0x88] sm:$0xff] }
   0xf   :  { %v338_v20 = vld [vmem:[%s716_s0 + $0xe0] sm:$0xff]  ;;  %v66_v21 = vsub.f32 %v335_v18, %v336_v19  ;;  %334 = vst [vmem:[%s718_s2 + $0xa0] sm:$0xff] %v56_v17  ;;  %v146_v44 = vsub.f32 %v359_v41, %v360_v42  ;;  %v362_v45 = vld [vmem:[%s716_s0 + $0xf0] sm:$0xff]  ;;  %358 = vst [vmem:[%s718_s2 + $0xb0] sm:$0xff] %v136_v43 }
  0x10   :  { %v339_v22 = vld [vmem:[%s717_s1 + $0xe0] sm:$0xff]  ;;  %v363_v46 = vld [vmem:[%s717_s1 + $0xf0] sm:$0xff]  ;;  %v378_v60 = vld [vmem:[%s717_s1 + $0x88] sm:$0xff]  ;;  %376 = vst [vmem:[%s718_s2 + $0x68] sm:$0xff] %v196_v61 }
  0x11   :  { %v76_v25 = vsub.f32 %v338_v20, %v339_v22  ;;  %337 = vst [vmem:[%s718_s2 + $0xc0] sm:$0xff] %v66_v21  ;;  %v156_v48 = vsub.f32 %v362_v45, %v363_v46  ;;  %361 = vst [vmem:[%s718_s2 + $0xd0] sm:$0xff] %v146_v44  ;;  %v206_v62 = vsub.f32 %v377_v59, %v378_v60  ;;  %v380_v63 = vld [vmem:[%s716_s0 + $0xa8] sm:$0xff]  ;;  %v389_v8 = vld [vmem:[%s716_s0 + $0x18] sm:$0xff] }
  0x12   :  { %v381_v0 = vld [vmem:[%s717_s1 + $0xa8] sm:$0xff]  ;;  %v390_v9 = vld [vmem:[%s717_s1 + $0x18] sm:$0xff] }
  0x13   :  { %340 = vst [vmem:[%s718_s2 + $0xe0] sm:$0xff] %v76_v25  ;;  %364 = vst [vmem:[%s718_s2 + $0xf0] sm:$0xff] %v156_v48  ;;  %v383_v1 = vld [vmem:[%s716_s0 + $0xc8] sm:$0xff]  ;;  %v216_v2 = vsub.f32 %v380_v63, %v381_v0  ;;  %v392_v10 = vld [vmem:[%s716_s0 + $0x38] sm:$0xff]  ;;  %v246_v11 = vsub.f32 %v389_v8, %v390_v9 }
  0x14   :  { %v384_v3 = vld [vmem:[%s717_s1 + $0xc8] sm:$0xff]  ;;  %379 = vst [vmem:[%s718_s2 + $0x88] sm:$0xff] %v206_v62  ;;  %v393_v12 = vld [vmem:[%s717_s1 + $0x38] sm:$0xff] }
  0x15   :  { %v386_v4 = vld [vmem:[%s716_s0 + $0xe8] sm:$0xff]  ;;  %v226_v6 = vsub.f32 %v383_v1, %v384_v3  ;;  %382 = vst [vmem:[%s718_s2 + $0xa8] sm:$0xff] %v216_v2  ;;  %v395_v13 = vld [vmem:[%s716_s0 + $0x58] sm:$0xff]  ;;  %v256_v15 = vsub.f32 %v392_v10, %v393_v12  ;;  %391 = vst [vmem:[%s718_s2 + $0x18] sm:$0xff] %v246_v11 }
  0x16   :  { %v387_v5 = vld [vmem:[%s717_s1 + $0xe8] sm:$0xff]  ;;  %v396_v14 = vld [vmem:[%s717_s1 + $0x58] sm:$0xff] }
  0x17   :  { %v236_v7 = vsub.f32 %v386_v4, %v387_v5  ;;  %385 = vst [vmem:[%s718_s2 + $0xc8] sm:$0xff] %v226_v6  ;;  %v266_v16 = vsub.f32 %v395_v13, %v396_v14  ;;  %v398_v17 = vld [vmem:[%s716_s0 + $0x78] sm:$0xff]  ;;  %394 = vst [vmem:[%s718_s2 + $0x38] sm:$0xff] %v256_v15 }
  0x18   :  { %v399_v18 = vld [vmem:[%s717_s1 + $0x78] sm:$0xff] }
  0x19   :  { %388 = vst [vmem:[%s718_s2 + $0xe8] sm:$0xff] %v236_v7  ;;  %v401_v19 = vld [vmem:[%s716_s0 + $0x98] sm:$0xff]  ;;  %v276_v20 = vsub.f32 %v398_v17, %v399_v18  ;;  %397 = vst [vmem:[%s718_s2 + $0x58] sm:$0xff] %v266_v16 }
  0x1a   :  { %v402_v21 = vld [vmem:[%s717_s1 + $0x98] sm:$0xff] }
  0x1b   :  { %v404_v22 = vld [vmem:[%s716_s0 + $0xb8] sm:$0xff]  ;;  %v286_v24 = vsub.f32 %v401_v19, %v402_v21  ;;  %400 = vst [vmem:[%s718_s2 + $0x78] sm:$0xff] %v276_v20 }
  0x1c   :  { %v405_v23 = vld [vmem:[%s717_s1 + $0xb8] sm:$0xff] }
  0x1d   :  { %v296_v25 = vsub.f32 %v404_v22, %v405_v23  ;;  %v407_v26 = vld [vmem:[%s716_s0 + $0xd8] sm:$0xff]  ;;  %403 = vst [vmem:[%s718_s2 + $0x98] sm:$0xff] %v286_v24 }
  0x1e   :  { %v408_v27 = vld [vmem:[%s717_s1 + $0xd8] sm:$0xff] }
  0x1f   :  { %v410_v28 = vld [vmem:[%s716_s0 + $0xf8] sm:$0xff]  ;;  %v306_v29 = vsub.f32 %v407_v26, %v408_v27  ;;  %406 = vst [vmem:[%s718_s2 + $0xb8] sm:$0xff] %v296_v25 }
  0x20   :  { %v411_v30 = vld [vmem:[%s717_s1 + $0xf8] sm:$0xff] }
  0x21   :  { %v316_v31 = vsub.f32 %v410_v28, %v411_v30  ;;  %409 = vst [vmem:[%s718_s2 + $0xd8] sm:$0xff] %v306_v29 }
  0x23   :  { %412 = vst [vmem:[%s718_s2 + $0xf8] sm:$0xff] %v316_v31 }

// kernel: cognn_forward.1
= control target key start
LH: loop header
LB: loop body
LE: loop exit
PB: predicated region body
PF: predicated region fallthrough
CT: control target
= control target key end

     0   :  { %s2412_s27 = smov 0   ;;  %s2738_s0 = inlined_call_operand.vmem [shape: bf16[8,16,8], index: 0, kind: input, shape index: {}]   ;;  %s2739_s1 = inlined_call_operand.vmem [shape: bf16[8,16,16], index: 1, kind: input, shape index: {}]   ;;  %s2740_s2 = inlined_call_operand.vmem [shape: f32[8,2,16,2], index: 2, kind: input, shape index: {}]   ;;  %s2741_s3 = inlined_call_operand.vmem [shape: bf16[8,32], index: 3, kind: input, shape index: {}]   ;;  %s2742_s4 = inlined_call_operand.vmem [shape: f32[1,32], index: 4, kind: input, shape index: {}]   ;;  %s2743_s5 = inlined_call_operand.vmem [shape: f32[1,32], index: 5, kind: input, shape index: {}]   ;;  %s2744_s6 = inlined_call_operand.vmem [shape: f32[1,32], index: 6, kind: input, shape index: {}]   ;;  %s2745_s7 = inlined_call_operand.vmem [shape: bf16[2,32,32], index: 7, kind: input, shape index: {}]   ;;  %s2746_s8 = inlined_call_operand.vmem [shape: bf16[2,32,32], index: 8, kind: input, shape index: {}]   ;;  %s2747_s9 = inlined_call_operand.vmem [shape: f32[2,1,32], index: 9, kind: input, shape index: {}]   ;;  %s2748_s10 = inlined_call_operand.vmem [shape: bf16[32,32], index: 10, kind: input, shape index: {}]   ;;  %s2749_s11 = inlined_call_operand.vmem [shape: bf16[32,32], index: 11, kind: input, shape index: {}]   ;;  %s2750_s12 = inlined_call_operand.vmem [shape: f32[1,32], index: 12, kind: input, shape index: {}]   ;;  %s2751_s13 = inlined_call_operand.vmem [shape: bf16[32,2], index: 13, kind: input, shape index: {}]   ;;  %s2752_s14 = inlined_call_operand.vmem [shape: bf16[32,2], index: 14, kind: input, shape index: {}]   ;;  %s2753_s15 = inlined_call_operand.vmem [shape: f32[1,2], index: 15, kind: input, shape index: {}]   ;;  %s2754_s16 = inlined_call_operand.vmem [shape: bf16[32,4], index: 16, kind: input, shape index: {}]   ;;  %s2755_s17 = inlined_call_operand.vmem [shape: f32[1,4], index: 17, kind: input, shape index: {}]   ;;  %s2756_s18 = inlined_call_operand.vmem [shape: f32[8,1,4], index: 18, kind: output, shape index: {}]  }
   0x1   :  { %2757 = sst [smem:[#allocation2_spill]] %s2738_s0 }
   0x2   :  { %2758 = sst [smem:[#allocation3_spill]] %s2739_s1 }
   0x3   :  { %2759 = sst [smem:[#allocation4_spill]] %s2740_s2 }
   0x4 LB: > { %s1962_s28 = sadd.s32 4294967295, %s2311_s27   ;;  %p1966_p0 = scmp.ge.s32.totalorder %s2311_s27, 1  ;;  %s2311_s27 = sphi %s2412_s27, %s28_s27  }
   0x5   : > { %p532_p1 = scmp.lt.s32.totalorder %s2311_s27, 9 }
   0x7   : > { %p533_p2 = pnand %p1966_p0, %p532_p1 }
   0x8   : > { %v623_v0 = vld [vmem:[%s2741_s3] sm:$0xf] (!%p533_p2)  ;;  %vm640_vm0 = vcmask (!%p533_p2), 1043456   ;;  %p594_p3 = scmp.lt.s32.totalorder (!%p533_p2), %s1962_s28, 7  ;;  %v2313_v1 = vmov (!%p533_p2), 0.0   ;;  %vm2314_vm1 = vmmov (!%p533_p2), 0  }
   0x9   : > { %536 = sbr.rel (%p533_p2) target bundleno = 4343 (0x10f7), region = 92  ;;  %2091 = vmatprep.subr.bf16.mxu0 (!%p533_p2), %v2313_v1  ;;  %v642_v2 = vsel (!%p533_p2), %vm640_vm0, %v623_v0, 0  ;;  %2093 = vmatprep.mubr.msk.bf16.mxu0 (!%p533_p2), %vm2314_vm1, %v2313_v1  ;;  %vm636_vm2 = vcmask (!%p533_p2), 64512   ;;  %s2760_s20 = sld [smem:[#allocation2_spill]] (!%p533_p2)  ;;  %v1973_v4 = vld [vmem:[%s2742_s4] ss:$0 sm:$0xff] (!%p533_p2) }
   0xa   : > { %2092 = vmatpush3.bf16.msra.mxu0 (!%p533_p2), %v642_v2  ;;  %2097 = vmatprep.subr.bf16.mxu1 (!%p533_p2), %v2313_v1  ;;  %s2761_s23 = sld [smem:[#allocation3_spill]] (!%p533_p2)  ;;  %vm687_vm3 = vcmask (!%p533_p2), 261120   ;;  %v2453_v25 = vld [vmem:[%s2749_s11] sm:$0xff] (!%p533_p2)   ;;  %vm737_vm4 = vcmask (!%p533_p2), 130048   ;;  %v2495_v45 = vld [vmem:[%s2748_s10 + $0x8] sm:$0xff] (!%p533_p2)   ;;  %s2762_s26 = sld [smem:[#allocation4_spill]] (!%p533_p2) }
   0xb   : > { %2099 = vmatprep.mubr.msk.bf16.mxu1 (!%p533_p2), %vm2314_vm1, %v2313_v1  ;;  %2103 = vmatprep.subr.bf16.mxu0 (!%p533_p2), %v2313_v1  ;;  %v2460_v34 = vld [vmem:[%s2743_s5] ss:$0 sm:$0xff] (!%p533_p2)  ;;  %v2509_v46 = vld [vmem:[%s2749_s11 + $0x8] sm:$0xff] (!%p533_p2)   ;;  %vm1889_vm9 = vcmask (!%p533_p2), 24576  }
   0xc   : > { %v2466_v38 = vld [vmem:[%s2744_s6] ss:$0 sm:$0xff] (!%p533_p2)  ;;  %v2526_v57 = vld [vmem:[%s2752_s14 + $0x8] sm:$0xff] (!%p533_p2)  }
   0xd   : > { %v2486_v44 = vld [vmem:[%s2748_s10] sm:$0xff] (!%p533_p2)  }
   0xe   : > { %v2519_v56 = vld [vmem:[%s2752_s14] sm:$0xff] (!%p533_p2)  }
   0xf   : > { %v2533_v59 = vld [vmem:[%s2750_s12] ss:$0 sm:$0xff] (!%p533_p2) }
  0x10   : > { %s2764_s28 = smov (!%p594_p3, %s1962_s28), 7 }
  0x11   : > { %s2035_s0 = sshll.u32 %s2764_s28, 3 }
  0x12   : > { %s598_s21 = scalar_lea.vmem %s2760_s20, %s2035_s0  ;;  %s2439_s24 = scalar_lea.vmem %s2761_s23, %s2035_s0 }
  0x13   : > { %v2273_v3 = vld [vmem:[%s598_s21] sm:$0xff]   ;;  %s2037_s23 = sshll.u32 %s2764_s28, 5  ;;  %s611_s20 = scalar_lea.vmem %s2756_s18, %s2764_s28 }
  0x14   : > { %2094 = vmatmul.mubr.msk.bf16.vlgmr.msra.gmra.mrb[0].mxu0 %vm636_vm2, %v2273_v3  ;;  %v2480_v43 = vld [vmem:[%s2439_s24] sm:$0xff]   ;;  %s2566_s29 = scalar_lea.vmem %s2762_s26, %s2037_s23 }
  0x15   : > { %2107 = vmatprep.mubr.msk.bf16.mxu0 %vm2314_vm1, %v2313_v1  ;;  %2104 = vmatpush3.bf16.msra.mxu0 %v2453_v25 }
  0x16   : > { %2105 = vmatprep.subr.bf16.mxu0 %v2313_v1 }
  0x19   : > { %2106 = vmatpush3.bf16.msra.mxu0 %v2509_v46 }
  0x1a   : > { %2119 = vmatprep.subr.bf16.mxu0 %v2313_v1 }
  0xe7   : > { %v678_v5 = vpop.f32.mrb[0].mxu0 }
  0xe8   : > { %v679_v6 = vadd.f32 %v1973_v4, %v678_v5  ;;  %v2095_v7 = vpop.f32.mrb[1].mxu0 }
  0xe9   : > { %v681_v8 = vpop.f32.mrb[2].mxu0 }
  0xea   : > { %v685_v9 = vmax.f32 %v679_v6, 0.0  ;;  %v682_v10 = vadd.f32 %v1973_v4, %v681_v8  ;;  %v2096_v11 = vpop.f32.mrb[3].mxu0  ;;  %v2540_v6 = vld [vmem:[%s2751_s13] sm:$0xff]   ;;  %v2547_v8 = vld [vmem:[%s2751_s13 + $0x8] sm:$0xff]  }
  0xec   : > { %v686_v12 = vmax.f32 %v682_v10, 0.0  ;;  %v688_v13 = vsel %vm687_vm3, %v685_v9, 0.0 }
  0xed   : > { %689 = vadd.xlane.f32.xlu0 %v688_v13 }
  0xee   : > { %v691_v14 = vsel %vm687_vm3, %v686_v12, 0.0 }
  0xf1   : > { %692 = vadd.xlane.f32.xlu0 %v691_v14 }
 0x17a   : > { %v690_v15 = vpop.xlane.xlu0 %689 }
 0x17b   : > { %v695_v16 = vmul.f32 0.03125, %v690_v15 }
 0x17d   : > { %v697_v17 = vsub.f32 %v685_v9, %v695_v16 }
 0x17e   : > { %v693_v18 = vpop.xlane.xlu0 %692 }
 0x17f   : > { %v696_v19 = vmul.f32 0.03125, %v693_v18  ;;  %v699_v20 = vmul.f32 %v697_v17, %v697_v17  ;;  %v2315_v18 = vmov 0  }
 0x180   : > { %2255 = vset.pattern.permute.xlu1 %v2315_v18 }
 0x181   : > { %v698_v21 = vsub.f32 %v686_v12, %v696_v19  ;;  %v701_v22 = vsel %vm687_vm3, %v699_v20, 0.0  ;;  %v2316_v19 = vmov 1  }
 0x182   : > { %702 = vadd.xlane.f32.xlu1 %v701_v22  ;;  %2249 = vset.pattern.permute.xlu0 %v2316_v19 }
 0x183   : > { %v700_v23 = vmul.f32 %v698_v21, %v698_v21 }
 0x185   : > { %v704_v24 = vsel %vm687_vm3, %v700_v23, 0.0 }
 0x186   : > { %705 = vadd.xlane.f32.xlu1 %v704_v24  ;;  %v615_v24 = vld [vmem:[%s2566_s29] sm:$0xff] }
 0x20f   : > { %v703_v26 = vpop.xlane.xlu1 %702 }
 0x210   : > { %v707_v27 = vmul.f32 0.03125, %v703_v26 }
 0x212   : > { %v709_v28 = vadd.f32 1e-05, %v707_v27 }
 0x213   : > { %v706_v29 = vpop.xlane.xlu1 %705 }
 0x214   : > { %2293 = vrsqrt.f32 %v709_v28  ;;  %v708_v30 = vmul.f32 0.03125, %v706_v29 }
 0x216   : > { %v710_v31 = vadd.f32 1e-05, %v708_v30  ;;  %v616_v30 = vld [vmem:[%s2566_s29 + $0x8] sm:$0xff] }
 0x218   : > { %2295 = vrsqrt.f32 %v710_v31 }
 0x21e   : > { %v2294_v32 = vpop.eup %2293 }
 0x21f   : > { %v713_v33 = vmul.f32 %v2294_v32, %v697_v17 }
 0x221   : > { %v721_v37 = vmul.f32 %v2460_v34, %v713_v33 }
 0x222   : > { %v2296_v35 = vpop.eup %2295 }
 0x223   : > { %v714_v36 = vmul.f32 %v2296_v35, %v698_v21  ;;  %v2470_v40 = vadd.f32 %v2466_v38, %v721_v37  ;;  %v2571_v21 = vld [vmem:[%s2753_s15] ss:$0 sm:$0xff] }
 0x225   : > { %v722_v39 = vmul.f32 %v2460_v34, %v714_v36 }
 0x227   : > { %v2473_v41 = vadd.f32 %v2466_v38, %v722_v39 }
 0x229   : > { %v2477_v42 = vpack.c.bf16 %v2473_v41, %v2470_v40 }
 0x22b   : > { %2098 = vmatpush3.bf16.msra.mxu1 %v2477_v42 }
 0x22c   : > { %2111 = vmatprep.subr.bf16.mxu1 %v2313_v1 }
 0x22e   : > { %2100 = vmatmul.mubr.msk.bf16.vlgmr.msra.gmra.mrb[0].mxu1 %vm737_vm4, %v2480_v43 }
 0x22f   : > { %2112 = vmatpush3.bf16.msra.mxu1 %v2486_v44  ;;  %2115 = vmatprep.mubr.msk.bf16.mxu1 %vm2314_vm1, %v2313_v1 }
 0x230   : > { %2113 = vmatprep.subr.bf16.mxu1 %v2313_v1 }
 0x233   : > { %2114 = vmatpush3.bf16.msra.mxu1 %v2495_v45 }
 0x234   : > { %2127 = vmatprep.subr.bf16.mxu1 %v2313_v1 }
 0x236   : > { %2116 = vmatmul.mubr.msk.bf16.vlgmr.msra.gmra.mrb[4].mxu1 %vm687_vm3, %v2477_v42 }
 0x237   : > { %2129 = vmatprep.mubr.msk.bf16.mxu1 %vm2314_vm1, %v2313_v1 }
 0x301   : > { %v775_v47 = vpop.f32.mrb[0].mxu1 }
 0x302   : > { %v2101_v48 = vpop.f32.mrb[1].mxu1 }
 0x303   : > { %v778_v49 = vpop.f32.mrb[2].mxu1 }
 0x304   : > { %v786_v50 = vpack.c.bf16 %v778_v49, %v775_v47  ;;  %v2102_v51 = vpop.f32.mrb[3].mxu1 }
 0x306   : > { %2108 = vmatmul.mubr.msk.bf16.vlgmr.msra.gmra.mrb[4].mxu0 %vm687_vm3, %v786_v50 }
 0x307   : > { %2123 = vmatprep.mubr.msk.bf16.mxu0 %vm2314_vm1, %v2313_v1  ;;  %2120 = vmatpush3.bf16.msra.mxu0 %v2519_v56 }
 0x308   : > { %2121 = vmatprep.subr.bf16.mxu0 %v2313_v1 }
 0x309   : > { %v896_v52 = vpop.f32.mrb[4].mxu1 }
 0x30a   : > { %v2117_v53 = vpop.f32.mrb[5].mxu1 }
 0x30b   : > { %v899_v54 = vpop.f32.mrb[6].mxu1  ;;  %2122 = vmatpush3.bf16.msra.mxu0 %v2526_v57  ;;  %v2284_v53 = vld [vmem:[%s2745_s7 + $0x8] sm:$0xff]  }
 0x30c   : > { %v2118_v55 = vpop.f32.mrb[7].mxu1  ;;  %2133 = vmatprep.subr.bf16.mxu0 %v2313_v1 }
 0x3d9   : > { %v840_v58 = vpop.f32.mrb[4].mxu0 }
 0x3da   : > { %v897_v60 = vadd.f32 %v896_v52, %v840_v58  ;;  %v2109_v61 = vpop.f32.mrb[5].mxu0  ;;  %v2283_v52 = vld [vmem:[%s2745_s7] sm:$0xff]  }
 0x3db   : > { %v843_v62 = vpop.f32.mrb[6].mxu0 }
 0x3dc   : > { %v910_v63 = vadd.f32 %v2533_v59, %v897_v60  ;;  %v900_v0 = vadd.f32 %v899_v54, %v843_v62  ;;  %v2110_v2 = vpop.f32.mrb[7].mxu0  ;;  %v2285_v54 = vld [vmem:[%s2746_s8] sm:$0xff]  }
 0x3de   : > { %v911_v3 = vadd.f32 %v2533_v59, %v900_v0  ;;  %v912_v4 = vmax.f32 %v910_v63, 0.0 }
 0x3e0   : > { %v913_v5 = vmax.f32 %v911_v3, 0.0 }
 0x3e2   : > { %v914_v7 = vpack.c.bf16 %v913_v5, %v912_v4 }
 0x3e4   : > { %2124 = vmatmul.mubr.msk.bf16.vlgmr.msra.gmra.mrb[8].mxu0 %vm687_vm3, %v914_v7 }
 0x3e5   : > { %2134 = vmatpush3.bf16.msra.mxu0 %v2540_v6  ;;  %2137 = vmatprep.mubr.msk.bf16.mxu0 %vm2314_vm1, %v2313_v1 }
 0x3e6   : > { %2135 = vmatprep.subr.bf16.mxu0 %v2313_v1 }
 0x3e9   : > { %2136 = vmatpush3.bf16.msra.mxu0 %v2547_v8 }
 0x3ea   : > { %2147 = vmatprep.subr.bf16.mxu0 %v2313_v1 }
 0x3ec   : > { %2138 = vmatmul.mubr.msk.bf16.vlgmr.msra.gmra.mrb[12].mxu0 %vm687_vm3, %v914_v7 }
 0x3ed   : > { %2151 = vmatprep.mubr.msk.bf16.mxu0 %vm2314_vm1, %v2313_v1  ;;  %2148 = vmatpush3.bf16.msra.mxu0 %v2285_v54 }
 0x3ee   : > { %2149 = vmatprep.subr.bf16.mxu0 %v2313_v1 }
 0x4b7   : > { %v968_v9 = vpop.f32.mrb[8].mxu0 }
 0x4b8   : > { %v2125_v10 = vpop.f32.mrb[9].mxu0 }
 0x4b9   : > { %v971_v11 = vpop.f32.mrb[10].mxu0  ;;  %v2004_v10 = vld [vmem:[%s2747_s9] ss:$0 sm:$0xff] }
 0x4ba   : > { %v979_v12 = vpack.c.bf16 %v971_v11, %v968_v9  ;;  %v2126_v13 = vpop.f32.mrb[11].mxu0 }
 0x4bc   : > { %2128 = vmatpush3.bf16.msra.mxu1 %v979_v12 }
 0x4bd   : > { %2141 = vmatprep.subr.bf16.mxu1 %v2313_v1 }
 0x4bf   : > { %2130 = vmatmul.mubr.msk.bf16.vlgmr.msra.gmra.mrb[8].mxu1 %vm737_vm4, %v2480_v43  ;;  %v1067_v14 = vpop.f32.mrb[12].mxu0 }
 0x4c0   : > { %v2139_v15 = vpop.f32.mrb[13].mxu0  ;;  %2143 = vmatprep.mubr.msk.bf16.mxu1 %vm2314_vm1, %v2313_v1 }
 0x4c1   : > { %v1070_v16 = vpop.f32.mrb[14].mxu0 }
 0x4c2   : > { %v2140_v17 = vpop.f32.mrb[15].mxu0 }
 0x592   : > { %v1014_v20 = vpop.f32.mrb[8].mxu1 }
 0x593   : > { %v1068_v22 = vadd.f32 %v1067_v14, %v1014_v20  ;;  %v2131_v23 = vpop.f32.mrb[9].mxu1 }
 0x594   : > { %v1017_v26 = vpop.f32.mrb[10].mxu1 }
 0x595   : > { %v1081_v27 = vadd.f32 %v2571_v21, %v1068_v22  ;;  %v1071_v28 = vadd.f32 %v1070_v16, %v1017_v26  ;;  %v2132_v29 = vpop.f32.mrb[11].mxu1 }
 0x597   : > { %v1083_v31 = vadd.f32 %v1081_v27, %v615_v24  ;;  %v1082_v32 = vadd.f32 %v2571_v21, %v1071_v28 }
 0x599   : > { %vm1085_vm5 = vcmp.ge.f32.partialorder %v1083_v31, 0.0  ;;  %v1084_v33 = vadd.f32 %v1082_v32, %v616_v30 }
 0x59a   : > { %v1995_v35 = vsel %vm1085_vm5, 1.0, %v2313_v1 }
 0x59b   : > { %vm1086_vm6 = vcmp.ge.f32.partialorder %v1084_v33, 0.0 }
 0x59c   : > { %v1996_v36 = vsel %vm1086_vm6, 1.0, %v2313_v1 }
 0x59d   : > { %v2256_v37 = vpack.i.bf16 %v1996_v36, %v1995_v35 }
 0x59f   : > { %2257 = vperm.xlu1 %2255, %v2256_v37   ;;  %2251 = vperm.xlu0 %2249, %v2256_v37  }
 0x5a3   : > { %2261 = vset.pattern.permute.xlu1 %v2316_v19  ;;  %2267 = vset.pattern.permute.xlu0 %v2315_v18 }
 0x61e   : > { %v2252_v39 = vpop.permute.xlu0 %2251 }
 0x61f   : > { %v2254_v47 = vunpack.i.h.bf16 %v2252_v39  ;;  %v2253_v48 = vunpack.i.l.bf16 %v2252_v39 }
 0x621   : > { %v1102_v49 = vmul.f32 %v2254_v47, %v2473_v41  ;;  %v1101_v50 = vmul.f32 %v2253_v48, %v2470_v40 }
 0x623   : > { %v1103_v51 = vpack.c.bf16 %v1102_v49, %v1101_v50 }
 0x625   : > { %2142 = vmatpush3.bf16.msra.mxu1 %v1103_v51 }
 0x626   : > { %2155 = vmatprep.subr.bf16.mxu1 %v2313_v1 }
 0x628   : > { %2144 = vmatmul.mubr.msk.bf16.vlgmr.msra.gmra.mrb[12].mxu1 %vm737_vm4, %v2480_v43 }
 0x629   : > { %2156 = vmatpush3.bf16.msra.mxu1 %v2283_v52  ;;  %2159 = vmatprep.mubr.msk.bf16.mxu1 %vm2314_vm1, %v2313_v1 }
 0x62a   : > { %2157 = vmatprep.subr.bf16.mxu1 %v2313_v1 }
 0x62d   : > { %2158 = vmatpush3.bf16.msra.mxu1 %v2284_v53 }
 0x62e   : > { %2169 = vmatprep.subr.bf16.mxu1 %v2313_v1 }
 0x630   : > { %2160 = vmatmul.mubr.msk.bf16.vlgmr.msra.gmra.mrb[16].mxu1 %vm687_vm3, %v2477_v42  ;;  %v2258_v42 = vpop.permute.xlu1 %2257 }
 0x631   : > { %2170 = vmatpush3.bf16.msra.mxu1 %v2453_v25  ;;  %2173 = vmatprep.mubr.msk.bf16.mxu1 %vm2314_vm1, %v2313_v1  ;;  %v2286_v25 = vld [vmem:[%s2746_s8 + $0x8] sm:$0xff]   ;;  %v2260_v58 = vunpack.i.h.bf16 %v2258_v42 }
 0x632   : > { %2171 = vmatprep.subr.bf16.mxu1 %v2313_v1  ;;  %2150 = vmatpush3.bf16.msra.mxu0 %v2286_v25 }
 0x633   : > { %2163 = vmatprep.subr.bf16.mxu0 %v2313_v1 }
 0x635   : > { %2172 = vmatpush3.bf16.msra.mxu1 %v2509_v46  ;;  %v2259_v46 = vunpack.i.l.bf16 %v2258_v42 }
 0x636   : > { %2185 = vmatprep.subr.bf16.mxu1 %v2313_v1 }
 0x6fb   : > { %v1138_v55 = vpop.f32.mrb[12].mxu1 }
 0x6fc   : > { %v2145_v60 = vpop.f32.mrb[13].mxu1  ;;  %v1153_v62 = vmul.f32 %v2259_v46, %v1138_v55 }
 0x6fd   : > { %v1141_v61 = vpop.f32.mrb[14].mxu1 }
 0x6fe   : > { %v1154_v63 = vmul.f32 %v2260_v58, %v1141_v61  ;;  %v2146_v0 = vpop.f32.mrb[15].mxu1 }
 0x700   : > { %v1159_v2 = vpack.c.bf16 %v1154_v63, %v1153_v62 }
 0x702   : > { %2152 = vmatmul.mubr.msk.bf16.vlgmr.msra.gmra.mrb[16].mxu0 %vm687_vm3, %v1159_v2 }
 0x703   : > { %v1266_v3 = vpop.f32.mrb[16].mxu1  ;;  %2165 = vmatprep.mubr.msk.bf16.mxu0 %vm2314_vm1, %v2313_v1 }
 0x704   : > { %v2161_v4 = vpop.f32.mrb[17].mxu1 }
 0x705   : > { %v1269_v5 = vpop.f32.mrb[18].mxu1 }
 0x706   : > { %v2162_v7 = vpop.f32.mrb[19].mxu1 }
 0x7d5   : > { %v1213_v9 = vpop.f32.mrb[16].mxu0 }
 0x7d6   : > { %v1267_v11 = vadd.f32 %v1266_v3, %v1213_v9  ;;  %v2153_v12 = vpop.f32.mrb[17].mxu0 }
 0x7d7   : > { %v1216_v13 = vpop.f32.mrb[18].mxu0 }
 0x7d8   : > { %v1280_v14 = vadd.f32 %v2004_v10, %v1267_v11  ;;  %v1270_v15 = vadd.f32 %v1269_v5, %v1216_v13  ;;  %v2154_v16 = vpop.f32.mrb[19].mxu0 }
 0x7da   : > { %v1282_v17 = vmax.f32 %v1280_v14, 0.0  ;;  %v1281_v18 = vadd.f32 %v2004_v10, %v1270_v15 }
 0x7dc   : > { %v1283_v19 = vmax.f32 %v1281_v18, 0.0  ;;  %v1284_v20 = vadd.f32 %v1282_v17, %v2470_v40 }
 0x7de   : > { %v1286_v22 = vsel %vm687_vm3, %v1284_v20, 0.0  ;;  %v1285_v23 = vadd.f32 %v1283_v19, %v2473_v41 }
 0x7df   : > { %1287 = vadd.xlane.f32.xlu1 %v1286_v22 }
 0x7e0   : > { %v1289_v24 = vsel %vm687_vm3, %v1285_v23, 0.0 }
 0x7e1   : > { %1290 = vadd.xlane.f32.xlu0 %v1289_v24 }
 0x86c   : > { %v1288_v26 = vpop.xlane.xlu1 %1287 }
 0x86d   : > { %v1292_v27 = vmul.f32 0.03125, %v1288_v26 }
 0x86e   : > { %v1291_v28 = vpop.xlane.xlu0 %1290 }
 0x86f   : > { %v1294_v29 = vsub.f32 %v1284_v20, %v1292_v27  ;;  %v1293_v30 = vmul.f32 0.03125, %v1291_v28 }
 0x871   : > { %v1295_v31 = vsub.f32 %v1285_v23, %v1293_v30  ;;  %v1296_v32 = vmul.f32 %v1294_v29, %v1294_v29  ;;  %v617_v23 = vld [vmem:[%s2566_s29 + $0x10] sm:$0xff] }
 0x873   : > { %v1298_v33 = vsel %vm687_vm3, %v1296_v32, 0.0  ;;  %v1297_v35 = vmul.f32 %v1295_v31, %v1295_v31 }
 0x874   : > { %1299 = vadd.xlane.f32.xlu1 %v1298_v33 }
 0x875   : > { %v1301_v40 = vsel %vm687_vm3, %v1297_v35, 0.0 }
 0x878   : > { %1302 = vadd.xlane.f32.xlu1 %v1301_v40 }
 0x901   : > { %v1300_v36 = vpop.xlane.xlu1 %1299 }
 0x902   : > { %v1304_v41 = vmul.f32 0.03125, %v1300_v36 }
 0x904   : > { %v1306_v37 = vadd.f32 1e-05, %v1304_v41 }
 0x905   : > { %v1303_v39 = vpop.xlane.xlu1 %1302 }
 0x906   : > { %2297 = vrsqrt.f32 %v1306_v37  ;;  %v1305_v47 = vmul.f32 0.03125, %v1303_v39 }
 0x908   : > { %v1307_v48 = vadd.f32 1e-05, %v1305_v47 }
 0x90a   : > { %2299 = vrsqrt.f32 %v1307_v48 }
 0x910   : > { %v2298_v49 = vpop.eup %2297 }
 0x911   : > { %v1310_v50 = vmul.f32 %v2298_v49, %v1294_v29  ;;  %v618_v29 = vld [vmem:[%s2566_s29 + $0x18] sm:$0xff] }
 0x912   : > { %v2288_v49 = vld [vmem:[%s2745_s7 + $0x18] sm:$0xff]  }
 0x913   : > { %v1312_v53 = vmul.f32 %v2460_v34, %v1310_v50  ;;  %v2289_v50 = vld [vmem:[%s2746_s8 + $0x10] sm:$0xff]  }
 0x914   : > { %v2300_v51 = vpop.eup %2299 }
 0x915   : > { %v1311_v52 = vmul.f32 %v2300_v51, %v1295_v31  ;;  %v2625_v25 = vadd.f32 %v2466_v38, %v1312_v53 }
 0x917   : > { %v1313_v54 = vmul.f32 %v2460_v34, %v1311_v52 }
 0x919   : > { %v2628_v42 = vadd.f32 %v2466_v38, %v1313_v54 }
 0x91b   : > { %v2632_v55 = vpack.c.bf16 %v2628_v42, %v2625_v25 }
 0x91d   : > { %2164 = vmatpush3.bf16.msra.mxu0 %v2632_v55 }
 0x91e   : > { %2177 = vmatprep.subr.bf16.mxu0 %v2313_v1 }
 0x920   : > { %2166 = vmatmul.mubr.msk.bf16.vlgmr.msra.gmra.mrb[20].mxu0 %vm737_vm4, %v2480_v43 }
 0x921   : > { %2178 = vmatpush3.bf16.msra.mxu0 %v2486_v44  ;;  %2181 = vmatprep.mubr.msk.bf16.mxu0 %vm2314_vm1, %v2313_v1 }
 0x922   : > { %2179 = vmatprep.subr.bf16.mxu0 %v2313_v1 }
 0x925   : > { %2180 = vmatpush3.bf16.msra.mxu0 %v2495_v45 }
 0x926   : > { %2193 = vmatprep.subr.bf16.mxu0 %v2313_v1 }
 0x928   : > { %2182 = vmatmul.mubr.msk.bf16.vlgmr.msra.gmra.mrb[24].mxu0 %vm687_vm3, %v2632_v55 }
 0x929   : > { %2195 = vmatprep.mubr.msk.bf16.mxu0 %vm2314_vm1, %v2313_v1 }
 0x9f3   : > { %v1351_v58 = vpop.f32.mrb[20].mxu0 }
 0x9f4   : > { %v2167_v46 = vpop.f32.mrb[21].mxu0 }
 0x9f5   : > { %v1354_v60 = vpop.f32.mrb[22].mxu0 }
 0x9f6   : > { %v1358_v61 = vpack.c.bf16 %v1354_v60, %v1351_v58  ;;  %v2168_v44 = vpop.f32.mrb[23].mxu0 }
 0x9f8   : > { %2174 = vmatmul.mubr.msk.bf16.vlgmr.msra.gmra.mrb[20].mxu1 %vm687_vm3, %v1358_v61 }
 0x9f9   : > { %2186 = vmatpush3.bf16.msra.mxu1 %v2519_v56  ;;  %2189 = vmatprep.mubr.msk.bf16.mxu1 %vm2314_vm1, %v2313_v1 }
 0x9fa   : > { %2187 = vmatprep.subr.bf16.mxu1 %v2313_v1 }
 0x9fb   : > { %v1440_v45 = vpop.f32.mrb[24].mxu0 }
 0x9fc   : > { %v2183_v62 = vpop.f32.mrb[25].mxu0 }
 0x9fd   : > { %v1443_v63 = vpop.f32.mrb[26].mxu0  ;;  %2188 = vmatpush3.bf16.msra.mxu1 %v2526_v57 }
 0x9fe   : > { %v2184_v0 = vpop.f32.mrb[27].mxu0  ;;  %2199 = vmatprep.subr.bf16.mxu1 %v2313_v1 }
 0xacb   : > { %v1396_v2 = vpop.f32.mrb[20].mxu1 }
 0xacc   : > { %v1441_v3 = vadd.f32 %v1440_v45, %v1396_v2  ;;  %v2175_v4 = vpop.f32.mrb[21].mxu1 }
 0xacd   : > { %v1399_v5 = vpop.f32.mrb[22].mxu1 }
 0xace   : > { %v1447_v7 = vadd.f32 %v2533_v59, %v1441_v3  ;;  %v1444_v56 = vadd.f32 %v1443_v63, %v1399_v5  ;;  %v2176_v9 = vpop.f32.mrb[23].mxu1  ;;  %v2029_v3 = vld [vmem:[%s2747_s9 + $0x1] ss:$0 sm:$0xff] }
 0xad0   : > { %v1448_v10 = vadd.f32 %v2533_v59, %v1444_v56  ;;  %v1449_v11 = vmax.f32 %v1447_v7, 0.0 }
 0xad2   : > { %v1450_v12 = vmax.f32 %v1448_v10, 0.0 }
 0xad4   : > { %v1451_v13 = vpack.c.bf16 %v1450_v12, %v1449_v11 }
 0xad6   : > { %2190 = vmatmul.mubr.msk.bf16.vlgmr.msra.gmra.mrb[24].mxu1 %vm687_vm3, %v1451_v13 }
 0xad7   : > { %2200 = vmatpush3.bf16.msra.mxu1 %v2540_v6  ;;  %2203 = vmatprep.mubr.msk.bf16.mxu1 %vm2314_vm1, %v2313_v1 }
 0xad8   : > { %2201 = vmatprep.subr.bf16.mxu1 %v2313_v1 }
 0xadb   : > { %2202 = vmatpush3.bf16.msra.mxu1 %v2547_v8 }
 0xadc   : > { %2213 = vmatprep.subr.bf16.mxu1 %v2313_v1 }
 0xade   : > { %2204 = vmatmul.mubr.msk.bf16.vlgmr.msra.gmra.mrb[28].mxu1 %vm687_vm3, %v1451_v13 }
 0xadf   : > { %2217 = vmatprep.mubr.msk.bf16.mxu1 %vm2314_vm1, %v2313_v1  ;;  %2214 = vmatpush3.bf16.msra.mxu1 %v2289_v50 }
 0xae0   : > { %2215 = vmatprep.subr.bf16.mxu1 %v2313_v1 }
 0xba9   : > { %v1489_v57 = vpop.f32.mrb[24].mxu1 }
 0xbaa   : > { %v2191_v59 = vpop.f32.mrb[25].mxu1 }
 0xbab   : > { %v1492_v14 = vpop.f32.mrb[26].mxu1 }
 0xbac   : > { %v1496_v15 = vpack.c.bf16 %v1492_v14, %v1489_v57  ;;  %v2192_v6 = vpop.f32.mrb[27].mxu1 }
 0xbae   : > { %2194 = vmatpush3.bf16.msra.mxu0 %v1496_v15 }
 0xbaf   : > { %2207 = vmatprep.subr.bf16.mxu0 %v2313_v1 }
 0xbb1   : > { %2196 = vmatmul.mubr.msk.bf16.vlgmr.msra.gmra.mrb[28].mxu0 %vm737_vm4, %v2480_v43  ;;  %v1572_v8 = vpop.f32.mrb[28].mxu1 }
 0xbb2   : > { %v2205_v16 = vpop.f32.mrb[29].mxu1  ;;  %2209 = vmatprep.mubr.msk.bf16.mxu0 %vm2314_vm1, %v2313_v1 }
 0xbb3   : > { %v1575_v17 = vpop.f32.mrb[30].mxu1 }
 0xbb4   : > { %v2206_v18 = vpop.f32.mrb[31].mxu1 }
 0xc84   : > { %v1531_v19 = vpop.f32.mrb[28].mxu0 }
 0xc85   : > { %v1573_v20 = vadd.f32 %v1572_v8, %v1531_v19  ;;  %v2197_v22 = vpop.f32.mrb[29].mxu0 }
 0xc86   : > { %v1534_v24 = vpop.f32.mrb[30].mxu0 }
 0xc87   : > { %v1579_v26 = vadd.f32 %v2571_v21, %v1573_v20  ;;  %v1576_v27 = vadd.f32 %v1575_v17, %v1534_v24  ;;  %v2198_v28 = vpop.f32.mrb[31].mxu0  ;;  %v2292_v24 = vld [vmem:[%s2754_s16 + $0x8] sm:$0xff]  }
 0xc89   : > { %v1581_v30 = vadd.f32 %v1579_v26, %v617_v23  ;;  %v1580_v31 = vadd.f32 %v2571_v21, %v1576_v27  ;;  %v2287_v21 = vld [vmem:[%s2745_s7 + $0x10] sm:$0xff]  }
 0xc8b   : > { %vm1583_vm7 = vcmp.ge.f32.partialorder %v1581_v30, 0.0  ;;  %v1582_v32 = vadd.f32 %v1580_v31, %v618_v29 }
 0xc8c   : > { %v2011_v33 = vsel %vm1583_vm7, 1.0, %v2313_v1 }
 0xc8d   : > { %vm1584_vm8 = vcmp.ge.f32.partialorder %v1582_v32, 0.0 }
 0xc8e   : > { %v2012_v35 = vsel %vm1584_vm8, 1.0, %v2313_v1 }
 0xc8f   : > { %v2268_v40 = vpack.i.bf16 %v2012_v35, %v2011_v33 }
 0xc91   : > { %2269 = vperm.xlu0 %2267, %v2268_v40   ;;  %2263 = vperm.xlu1 %2261, %v2268_v40  }
 0xd10   : > { %v2264_v36 = vpop.permute.xlu1 %2263  ;;  %v2270_v51 = vpop.permute.xlu0 %2269 }
 0xd11   : > { %v2266_v41 = vunpack.i.h.bf16 %v2264_v36  ;;  %v2265_v37 = vunpack.i.l.bf16 %v2264_v36  ;;  %v2272_v53 = vunpack.i.h.bf16 %v2270_v51  ;;  %v2271_v54 = vunpack.i.l.bf16 %v2270_v51 }
 0xd13   : > { %v1600_v39 = vmul.f32 %v2266_v41, %v2628_v42  ;;  %v1599_v47 = vmul.f32 %v2265_v37, %v2625_v25 }
 0xd15   : > { %v1601_v48 = vpack.c.bf16 %v1600_v39, %v1599_v47 }
 0xd17   : > { %2208 = vmatpush3.bf16.msra.mxu0 %v1601_v48 }
 0xd18   : > { %2221 = vmatprep.subr.bf16.mxu0 %v2313_v1 }
 0xd1a   : > { %2210 = vmatmul.mubr.msk.bf16.vlgmr.msra.gmra.mrb[32].mxu0 %vm737_vm4, %v2480_v43  ;;  %v2290_v43 = vld [vmem:[%s2746_s8 + $0x18] sm:$0xff]  }
 0xd1b   : > { %2222 = vmatpush3.bf16.msra.mxu0 %v2287_v21  ;;  %2225 = vmatprep.mubr.msk.bf16.mxu0 %vm2314_vm1, %v2313_v1 }
 0xd1c   : > { %2223 = vmatprep.subr.bf16.mxu0 %v2313_v1  ;;  %2216 = vmatpush3.bf16.msra.mxu1 %v2290_v43 }
 0xd1d   : > { %2229 = vmatprep.subr.bf16.mxu1 %v2313_v1 }
 0xd1f   : > { %2224 = vmatpush3.bf16.msra.mxu0 %v2288_v49 }
 0xd22   : > { %2226 = vmatmul.mubr.msk.bf16.vlgmr.msra.gmra.mrb[36].mxu0 %vm687_vm3, %v2632_v55 }
 0xded   : > { %v1636_v52 = vpop.f32.mrb[32].mxu0 }
 0xdee   : > { %v2211_v58 = vpop.f32.mrb[33].mxu0  ;;  %v1651_v46 = vmul.f32 %v2271_v54, %v1636_v52 }
 0xdef   : > { %v1639_v55 = vpop.f32.mrb[34].mxu0 }
 0xdf0   : > { %v1652_v60 = vmul.f32 %v2272_v53, %v1639_v55  ;;  %v2212_v61 = vpop.f32.mrb[35].mxu0 }
 0xdf2   : > { %v1658_v44 = vpack.c.bf16 %v1652_v60, %v1651_v46 }
 0xdf4   : > { %2218 = vmatmul.mubr.msk.bf16.vlgmr.msra.gmra.mrb[32].mxu1 %vm687_vm3, %v1658_v44 }
 0xdf5   : > { %v1766_v45 = vpop.f32.mrb[36].mxu0  ;;  %2233 = vmatprep.mubr.msk.bf16.mxu1 %vm2314_vm1, %v2313_v1 }
 0xdf6   : > { %v2227_v62 = vpop.f32.mrb[37].mxu0 }
 0xdf7   : > { %v1769_v63 = vpop.f32.mrb[38].mxu0 }
 0xdf8   : > { %v2228_v0 = vpop.f32.mrb[39].mxu0 }
 0xec7   : > { %v1713_v2 = vpop.f32.mrb[32].mxu1 }
 0xec8   : > { %v1767_v4 = vadd.f32 %v1766_v45, %v1713_v2  ;;  %v2219_v5 = vpop.f32.mrb[33].mxu1 }
 0xec9   : > { %v1716_v7 = vpop.f32.mrb[34].mxu1 }
 0xeca   : > { %v1781_v56 = vadd.f32 %v2029_v3, %v1767_v4  ;;  %v1770_v9 = vadd.f32 %v1769_v63, %v1716_v7  ;;  %v2220_v10 = vpop.f32.mrb[35].mxu1 }
 0xecc   : > { %v1783_v11 = vmax.f32 %v1781_v56, 0.0  ;;  %v1782_v12 = vadd.f32 %v2029_v3, %v1770_v9 }
 0xece   : > { %v1784_v13 = vmax.f32 %v1782_v12, 0.0  ;;  %v1785_v57 = vadd.f32 %v1783_v11, %v2625_v25 }
 0xed0   : > { %v1787_v59 = vsel %vm687_vm3, %v1785_v57, 0.0  ;;  %v1786_v14 = vadd.f32 %v1784_v13, %v2628_v42  ;;  %v2291_v42 = vld [vmem:[%s2754_s16] sm:$0xff]  }
 0xed1   : > { %1788 = vadd.xlane.f32.xlu1 %v1787_v59  ;;  %2230 = vmatpush3.bf16.msra.mxu1 %v2291_v42 }
 0xed2   : > { %v1790_v15 = vsel %vm687_vm3, %v1786_v14, 0.0  ;;  %2231 = vmatprep.subr.bf16.mxu1 %v2313_v1 }
 0xed5   : > { %1791 = vadd.xlane.f32.xlu1 %v1790_v15  ;;  %2232 = vmatpush3.bf16.msra.mxu1 %v2292_v24 }
 0xf5e   : > { %v1789_v6 = vpop.xlane.xlu1 %1788 }
 0xf5f   : > { %v1793_v8 = vmul.f32 0.03125, %v1789_v6 }
 0xf61   : > { %v1795_v16 = vsub.f32 %v1785_v57, %v1793_v8 }
 0xf62   : > { %v1792_v17 = vpop.xlane.xlu1 %1791 }
 0xf63   : > { %v1794_v18 = vmul.f32 0.03125, %v1792_v17  ;;  %v1797_v19 = vmul.f32 %v1795_v16, %v1795_v16 }
 0xf65   : > { %v1796_v20 = vsub.f32 %v1786_v14, %v1794_v18  ;;  %v1799_v22 = vsel %vm687_vm3, %v1797_v19, 0.0 }
 0xf66   : > { %1800 = vadd.xlane.f32.xlu1 %v1799_v22 }
 0xf67   : > { %v1798_v23 = vmul.f32 %v1796_v20, %v1796_v20 }
 0xf69   : > { %v1802_v25 = vsel %vm687_vm3, %v1798_v23, 0.0 }
 0xf6a   : > { %1803 = vadd.xlane.f32.xlu0 %v1802_v25 }
 0xff3   : > { %v1801_v26 = vpop.xlane.xlu1 %1800 }
 0xff4   : > { %v1805_v27 = vmul.f32 0.03125, %v1801_v26 }
 0xff6   : > { %v1807_v28 = vadd.f32 1e-05, %v1805_v27 }
 0xff7   : > { %v1804_v29 = vpop.xlane.xlu0 %1803 }
 0xff8   : > { %2301 = vrsqrt.f32 %v1807_v28  ;;  %v1806_v30 = vmul.f32 0.03125, %v1804_v29 }
 0xffa   : > { %v1808_v31 = vadd.f32 1e-05, %v1806_v30 }
 0xffc   : > { %2303 = vrsqrt.f32 %v1808_v31 }
0x1002   : > { %v2302_v32 = vpop.eup %2301 }
0x1003   : > { %v1811_v33 = vmul.f32 %v2302_v32, %v1795_v16 }
0x1005   : > { %v1813_v35 = vmul.f32 %v2460_v34, %v1811_v33 }
0x1006   : > { %v2304_v40 = vpop.eup %2303 }
0x1007   : > { %v1812_v36 = vmul.f32 %v2304_v40, %v1796_v20  ;;  %v1815_v41 = vadd.f32 %v2466_v38, %v1813_v35 }
0x1009   : > { %v1814_v1 = vmul.f32 %v2460_v34, %v1812_v36  ;;  %v1817_v39 = vsel %vm687_vm3, %v1815_v41, 0.0  ;;  %v1833_v34 = vld [vmem:[%s2755_s17] sm:$0x1] }
0x100b   : > { %v1816_v37 = vadd.f32 %v2466_v38, %v1814_v1 }
0x100d   : > { %v1818_v47 = vsel %vm687_vm3, %v1816_v37, 0.0 }
0x100e   : > { %v1819_v48 = vadd.f32 %v1818_v47, %v1817_v39 }
0x1010   : > { %v1820_v21 = vrot.slane %v1819_v48, 4 }
0x1012   : > { %v1821_v49 = vadd.f32 %v1820_v21, %v1819_v48 }
0x1014   : > { %v1822_v50 = vrot.slane %v1821_v49, 2 }
0x1016   : > { %v1823_v43 = vadd.f32 %v1822_v50, %v1821_v49 }
0x1018   : > { %v1824_v51 = vrot.slane %v1823_v43, 1 }
0x101a   : > { %v1825_v52 = vadd.f32 %v1824_v51, %v1823_v43 }
0x101c   : > { %v1827_v53 = vmul.f32 0.0625, %v1825_v52 }
0x101e   : > { %v1828_v54 = vpack.c.bf16 %v1827_v53, %v1827_v53 }
0x1020   : > { %2234 = vmatmul.mubr.msk.bf16.vlgmr.msra.gmra.mrb[36].mxu1 %vm687_vm3, %v1828_v54 }
0x10f3   : > { %v1883_v38 = vpop.f32.mrb[36].mxu1 }
0x10f4   : > { %v1884_v58 = vadd.f32 %v1883_v38, %v1833_v34  ;;  %v2235_v55 = vpop.f32.mrb[37].mxu1 }
0x10f5   : > { %v1886_v46 = vpop.f32.mrb[38].mxu1 }
0x10f6   : > { %1890 = vst.msk [vmem:[%s611_s20] sm:$0x1] %vm1889_vm9, %v1884_v58  ;;  %v2236_v60 = vpop.f32.mrb[39].mxu1 }
0x10f7 PF: > { %s28_s27 = sadd.s32 1, %s2311_s27  }
0x10f8   : > { %p25_p4 = scmp.ge.s32.totalorder %s28_s27, 10  }
0x10fa   :  { %27 = sbr.rel (!%p25_p4) target bundleno = 4 (0x4), region = 131 }

</bundles_post_ra>
